<compile_context>
chip_gen: v7x
topology: tpu7x:2x2x1
jax: 0.10.0
libtpu: 0.0.40
codegen_flags: <defaults>
</compile_context>

<pallas_src>
import jax
import jax.numpy as jnp
from jax.experimental import pallas as pl
from jax.experimental.pallas import tpu as pltpu


_VOCAB_TILE_TARGET = 2048   # raise to 4096-8192 on v5e (128 MiB VMEM, lowest HBM BW)


def _round_up(x, m):
    return ((x + m - 1) // m) * m


def _pick_vocab_tile(V, target=_VOCAB_TILE_TARGET):
    """Lane-dense (multiple-of-128) vocab tile, <= target.  Never returns V
    itself for odd vocab sizes; the (H, V) operands are padded instead so the
    projection always streams bounded, double-buffered tiles."""
    return min(_round_up(max(V, 1), 128), _round_up(target, 128))


# -----------------------------------------------------------------------------
# Fused kernel: embedding gather + attention('general') + 3-layer LSTM (step 0)
#               + vocab projection (every grid step, one V tile per step).
# -----------------------------------------------------------------------------
def _decoder_step_kernel(ids_ref,                        # (B,) int32   scalar prefetch (SMEM)
                         embed_hbm,                      # (V, E)       HBM (pl.ANY)
                         mem_ref,                        # (B, S, H)    VMEM, resident
                         h_ref, c_ref,                   # (3, B, H)    VMEM, resident (f32 state)
                         wattn_ref,                      # (H, H)       VMEM
                         w0e_ref, w0c_ref, w0h_ref, b0_ref,
                         w1_hbm, b1_ref,                 # (2,H,4H) HBM ; (1,4H)
                         w2_hbm, b2_ref,                 # (2,H,4H) HBM ; (1,4H)
                         wout_ref, bout_ref,             # (H, tv) ; (1, tv)   streamed V tiles
                         logits_ref,                     # (B, tv)      out tile
                         hout_ref, cout_ref,             # (3, B, H)    out, resident
                         emb_buf, h2_buf, w1_buf, w2_buf, emb_sem, w_sem):
    f32 = jnp.float32
    B = emb_buf.shape[0]
    H = h_ref.shape[-1]
    cdtype = mem_ref.dtype

    @pl.when(pl.program_id(0) == 0)
    def _step0():
        # ---- kick off the data-dependent / big weight DMAs first -------------
        emb_copies = [pltpu.make_async_copy(embed_hbm.at[pl.ds(ids_ref[b], 1)],
                                            emb_buf.at[pl.ds(b, 1)],
                                            emb_sem.at[b]) for b in range(B)]
        for cp in emb_copies:
            cp.start()
        w1_copy = pltpu.make_async_copy(w1_hbm, w1_buf, w_sem.at[0])
        w2_copy = pltpu.make_async_copy(w2_hbm, w2_buf, w_sem.at[1])
        w1_copy.start()
        w2_copy.start()

        # ---- attention ('general'), reassociated ------------------------------
        # torch: scores = (memory @ W_attn^T) . h  ==  memory . (h @ W_attn)
        h_query = h_ref[0].astype(cdtype)                                   # (B, H)
        v = jnp.dot(h_query, wattn_ref[...],
                    preferred_element_type=f32)                             # (B, H)
        v = v[:, None, :].astype(cdtype)                                    # (B, 1, H)
        scores = jnp.einsum('bth,bsh->bts', v, mem_ref[...],
                            preferred_element_type=f32)                     # (B, 1, S)
        scores = scores - jnp.max(scores, axis=-1, keepdims=True)
        p = jnp.exp(scores)
        # approx=True -> EUP reciprocal (free slot); ~1e-4 relative softmax perturbation.
        attn = p * pl.reciprocal(jnp.sum(p, axis=-1, keepdims=True), approx=True)
        context = jnp.einsum('bts,bsh->bth', attn.astype(cdtype), mem_ref[...],
                             preferred_element_type=f32)[:, 0, :]           # (B, H) f32

        def gates_to_hc(gates, c_prev):
            # Gate order (i, f, g, o) matches torch.nn.LSTM.
            i = jax.nn.sigmoid(gates[:, 0 * H:1 * H])
            f = jax.nn.sigmoid(gates[:, 1 * H:2 * H])
            g = jnp.tanh(gates[:, 2 * H:3 * H])
            o = jax.nn.sigmoid(gates[:, 3 * H:4 * H])
            c_new = f * c_prev + i * g
            h_new = o * jnp.tanh(c_new)
            return h_new, c_new

        # ---- LSTM layer 0: x0 = [emb, context] as separate matmuls (no concat)
        for cp in emb_copies:
            cp.wait()
        g0 = (jnp.dot(emb_buf[...], w0e_ref[...], preferred_element_type=f32)
              + jnp.dot(context.astype(cdtype), w0c_ref[...], preferred_element_type=f32)
              + jnp.dot(h_ref[0].astype(cdtype), w0h_ref[...], preferred_element_type=f32)
              + b0_ref[...])
        h0, c0 = gates_to_hc(g0, c_ref[0].astype(f32))

        # ---- LSTM layer 1 (weights arrive while attention / layer 0 computed)
        w1_copy.wait()
        g1 = (jnp.dot(h0.astype(cdtype), w1_buf[0], preferred_element_type=f32)
              + jnp.dot(h_ref[1].astype(cdtype), w1_buf[1], preferred_element_type=f32)
              + b1_ref[...])
        h1, c1 = gates_to_hc(g1, c_ref[1].astype(f32))

        # ---- LSTM layer 2
        w2_copy.wait()
        g2 = (jnp.dot(h1.astype(cdtype), w2_buf[0], preferred_element_type=f32)
              + jnp.dot(h_ref[2].astype(cdtype), w2_buf[1], preferred_element_type=f32)
              + b2_ref[...])
        h2, c2 = gates_to_hc(g2, c_ref[2].astype(f32))

        hout_ref[0] = h0.astype(hout_ref.dtype)
        hout_ref[1] = h1.astype(hout_ref.dtype)
        hout_ref[2] = h2.astype(hout_ref.dtype)
        cout_ref[0] = c0.astype(cout_ref.dtype)
        cout_ref[1] = c1.astype(cout_ref.dtype)
        cout_ref[2] = c2.astype(cout_ref.dtype)
        # Projection input, cast ONCE to the compute dtype (hoisted out of the V loop).
        h2_buf[...] = h2.astype(cdtype)

    # ---- vocab projection of this V tile (runs every grid step) --------------
    logits_ref[...] = (jnp.dot(h2_buf[...], wout_ref[...],
                               preferred_element_type=jnp.float32)
                       + bout_ref[...]).astype(logits_ref.dtype)


# -----------------------------------------------------------------------------
# Parameters
# -----------------------------------------------------------------------------
def init_params(key, voc_size, embed_size, hidden_size):
    """Deterministic synthetic parameters matching the PyTorch module's shapes."""
    E, H, V = embed_size, hidden_size, voc_size
    ks = jax.random.split(key, 8)

    def u(k, shape, scale):
        return jax.random.uniform(k, shape, jnp.float32, -scale, scale)

    params = {"embed": jax.random.normal(ks[0], (V, E), jnp.float32),
              "w_attn": u(ks[1], (H, H), 1.0 / H ** 0.5)}          # torch Linear weight (out, in)
    layer_in = [E + H, H, H]
    for l in range(3):
        kk = jax.random.split(ks[2 + l], 4)
        s = 1.0 / H ** 0.5
        params[f"w_ih{l}"] = u(kk[0], (4 * H, layer_in[l]), s)     # torch LSTM weight_ih_l{l}
        params[f"w_hh{l}"] = u(kk[1], (4 * H, H), s)               # torch LSTM weight_hh_l{l}
        params[f"b_ih{l}"] = u(kk[2], (4 * H,), s)
        params[f"b_hh{l}"] = u(kk[3], (4 * H,), s)
    params["w_out"] = u(ks[5], (V, H), 1.0 / H ** 0.5)             # torch Linear (out, in)
    params["b_out"] = u(ks[6], (V,), 1.0 / H ** 0.5)
    return params


def prepare_params(params, compute_dtype=jnp.bfloat16):
    """One-time (per model, NOT per decode step) weight re-layout:
    transposes, layer-0 W_ih split into [W_emb | W_ctx], Wx/Wh kept separate,
    b_ih + b_hh folded, W_out/b_out padded to a multiple of the vocab tile,
    and the big operands cast to the compute dtype (bf16 by default)."""
    H = params["w_attn"].shape[0]
    E = params["embed"].shape[1]
    V = params["w_out"].shape[0]
    tv = _pick_vocab_tile(V)
    V_pad = _round_up(V, tv)

    w_out_t = jnp.pad(params["w_out"].T, ((0, 0), (0, V_pad - V))).astype(compute_dtype)
    b_out = jnp.pad(params["b_out"], (0, V_pad - V)).reshape(1, V_pad).astype(jnp.float32)

    prep = {
        "embed": params["embed"].astype(compute_dtype),            # (V, E), stays in HBM
        "w_attn": params["w_attn"].astype(compute_dtype),          # used as h @ W_attn
        "w_out_t": w_out_t,                                        # (H, V_pad)
        "b_out": b_out,                                            # (1, V_pad) f32
    }
    # Layer 0: split W_ih into embedding / context parts so no (B, E+H) concat
    # is needed in the kernel; Wx and Wh stay separate (two MXU pushes).
    w_ih0 = params["w_ih0"]                                        # (4H, E+H)
    prep["w0_emb"] = w_ih0[:, :E].T.astype(compute_dtype)          # (E, 4H)
    prep["w0_ctx"] = w_ih0[:, E:].T.astype(compute_dtype)          # (H, 4H)
    prep["w0_h"] = params["w_hh0"].T.astype(compute_dtype)         # (H, 4H)
    prep["b_lstm0"] = (params["b_ih0"] + params["b_hh0"]).reshape(1, 4 * H).astype(jnp.float32)
    # Layers 1/2: stacked [Wx^T, Wh^T]; these stay in HBM and are DMA'd manually.
    for l in (1, 2):
        prep[f"w_lstm{l}"] = jnp.stack([params[f"w_ih{l}"].T,
                                        params[f"w_hh{l}"].T]).astype(compute_dtype)  # (2,H,4H)
        prep[f"b_lstm{l}"] = (params[f"b_ih{l}"] + params[f"b_hh{l}"]
                              ).reshape(1, 4 * H).astype(jnp.float32)
    return prep


# -----------------------------------------------------------------------------
# Forward (one decode step)
# -----------------------------------------------------------------------------
def decoder_attn_forward(prep, input_ids, h, c, memory):
    """Equivalent of DecoderAttn.forward(input, (h, c), memory) for one step."""
    B, H = h.shape[1], h.shape[2]
    V, E = prep["embed"].shape
    V_pad = prep["w_out_t"].shape[1]
    S = memory.shape[1]
    cdtype = prep["w_attn"].dtype
    tv = _pick_vocab_tile(V)
    nv = V_pad // tv

    # In a real decode loop this cast is hoisted (memory is constant per sequence).
    mem_c = memory.astype(cdtype)

    grid_spec = pltpu.PrefetchScalarGridSpec(
        num_scalar_prefetch=1,                                    # input_ids -> SMEM
        grid=(nv,),
        in_specs=[
            pl.BlockSpec(memory_space=pl.ANY),                    # embed table (HBM, row-gathered)
            pl.BlockSpec((B, S, H), lambda j, ids: (0, 0, 0)),    # memory (resident)
            pl.BlockSpec((3, B, H), lambda j, ids: (0, 0, 0)),    # h
            pl.BlockSpec((3, B, H), lambda j, ids: (0, 0, 0)),    # c
            pl.BlockSpec((H, H), lambda j, ids: (0, 0)),          # w_attn
            pl.BlockSpec((E, 4 * H), lambda j, ids: (0, 0)),      # w0_emb
            pl.BlockSpec((H, 4 * H), lambda j, ids: (0, 0)),      # w0_ctx
            pl.BlockSpec((H, 4 * H), lambda j, ids: (0, 0)),      # w0_h
            pl.BlockSpec((1, 4 * H), lambda j, ids: (0, 0)),      # b0
            pl.BlockSpec(memory_space=pl.ANY),                    # w_lstm1 (HBM, manual DMA)
            pl.BlockSpec((1, 4 * H), lambda j, ids: (0, 0)),      # b1
            pl.BlockSpec(memory_space=pl.ANY),                    # w_lstm2 (HBM, manual DMA)
            pl.BlockSpec((1, 4 * H), lambda j, ids: (0, 0)),      # b2
            pl.BlockSpec((H, tv), lambda j, ids: (0, j)),         # W_out^T tile (streamed)
            pl.BlockSpec((1, tv), lambda j, ids: (0, j)),         # b_out tile
        ],
        out_specs=[
            pl.BlockSpec((B, tv), lambda j, ids: (0, j)),         # logits tile (lane-dense)
            pl.BlockSpec((3, B, H), lambda j, ids: (0, 0, 0)),    # h_out (resident)
            pl.BlockSpec((3, B, H), lambda j, ids: (0, 0, 0)),    # c_out (resident)
        ],
        scratch_shapes=[
            pltpu.VMEM((B, E), cdtype),                           # gathered embeddings
            pltpu.VMEM((B, H), cdtype),                           # h2 (projection input)
            pltpu.VMEM((2, H, 4 * H), cdtype),                    # layer-1 weights
            pltpu.VMEM((2, H, 4 * H), cdtype),                    # layer-2 weights
            pltpu.SemaphoreType.DMA((B,)),                        # embedding-row DMAs
            pltpu.SemaphoreType.DMA((2,)),                        # layer-1/2 weight DMAs
        ],
    )

    operands = (prep["embed"], mem_c, h, c, prep["w_attn"],
                prep["w0_emb"], prep["w0_ctx"], prep["w0_h"], prep["b_lstm0"],
                prep["w_lstm1"], prep["b_lstm1"],
                prep["w_lstm2"], prep["b_lstm2"],
                prep["w_out_t"], prep["b_out"])

    flops = int(2 * B * H * H + 4 * B * S * H
                + 2 * B * (E + 2 * H) * 4 * H          # LSTM layer 0
                + 2 * (2 * B * 2 * H * 4 * H)          # LSTM layers 1, 2
                + 2 * B * H * V_pad)                   # vocab projection
    transcendentals = int(B * S + B + 15 * B * H)
    bytes_accessed = int(sum(a.size * a.dtype.itemsize for a in operands)
                         + B * V_pad * 4 + 2 * 3 * B * H * h.dtype.itemsize)

    logits_pad, h_out, c_out = pl.pallas_call(
        _decoder_step_kernel,
        grid_spec=grid_spec,
        out_shape=(jax.ShapeDtypeStruct((B, V_pad), jnp.float32),
                   jax.ShapeDtypeStruct((3, B, H), h.dtype),
                   jax.ShapeDtypeStruct((3, B, H), c.dtype)),
        compiler_params=pltpu.CompilerParams(
            # Step 0 feeds every later vocab tile through VMEM scratch -> sequential.
            dimension_semantics=("arbitrary",),
            vmem_limit_bytes=48 * 1024 * 1024),
        cost_estimate=pl.CostEstimate(flops=flops,
                                      transcendentals=transcendentals,
                                      bytes_accessed=bytes_accessed),
    )(input_ids.astype(jnp.int32), *operands)

    return logits_pad[:, :V], (h_out, c_out)


# -----------------------------------------------------------------------------
# Pure-JAX reference (mirrors the PyTorch forward) for a correctness spot-check.
# -----------------------------------------------------------------------------
def _reference_forward(params, input_ids, h, c, memory):
    emb = params["embed"][input_ids]
    energy = memory @ params["w_attn"].T
    scores = jnp.einsum("bsh,bh->bs", energy, h[0])
    attn = jax.nn.softmax(scores, axis=-1)
    context = jnp.einsum("bs,bsh->bh", attn, memory)
    x = jnp.concatenate([emb, context], axis=-1)
    hs, cs = [], []
    for l in range(3):
        gates = (x @ params[f"w_ih{l}"].T + h[l] @ params[f"w_hh{l}"].T
                 + params[f"b_ih{l}"] + params[f"b_hh{l}"])
        i, f, g, o = jnp.split(gates, 4, axis=-1)
        c_new = jax.nn.sigmoid(f) * c[l] + jax.nn.sigmoid(i) * jnp.tanh(g)
        h_new = jax.nn.sigmoid(o) * jnp.tanh(c_new)
        hs.append(h_new)
        cs.append(c_new)
        x = h_new
    logits = x @ params["w_out"].T + params["b_out"]
    return logits, (jnp.stack(hs), jnp.stack(cs))


if __name__ == "__main__":
    # Small, module-consistent sizes: voc=64, embed=32, hidden=32, batch=2, seq=8.
    V, E, H = 64, 32, 32
    B, S = 2, 8

    key = jax.random.PRNGKey(0)
    kp, k_ids, k_mem, k_h, k_c = jax.random.split(key, 5)
    params = init_params(kp, V, E, H)

    input_ids = jax.random.randint(k_ids, (B,), 0, V, dtype=jnp.int32)
    memory = jax.random.normal(k_mem, (B, S, H), jnp.float32)      # encoder memory
    h = 0.1 * jax.random.normal(k_h, (3, B, H), jnp.float32)       # LSTM hidden state
    c = 0.1 * jax.random.normal(k_c, (3, B, H), jnp.float32)       # LSTM cell state

    # Reference first (independent of the kernels).
    ref_logits, (ref_h, ref_c) = _reference_forward(params, input_ids, h, c, memory)

    fwd = jax.jit(decoder_attn_forward)

    # --- f32 weights: strict correctness check (only the approx-reciprocal
    #     softmax and matmul reassociation differ from the reference). ---------
    prep32 = prepare_params(params, compute_dtype=jnp.float32)
    logits32, (h32, c32) = fwd(prep32, input_ids, h, c, memory)
    jax.block_until_ready((logits32, h32, c32))
    assert logits32.shape == (B, V) and h32.shape == (3, B, H) and c32.shape == (3, B, H)
    assert float(jnp.max(jnp.abs(logits32 - ref_logits))) < 5e-3
    assert float(jnp.max(jnp.abs(h32 - ref_h))) < 5e-3
    assert float(jnp.max(jnp.abs(c32 - ref_c))) < 5e-3

    # --- bf16 weights/activations (the performance default): loose sanity check
    #     against the f32 reference (bf16 operand rounding dominates). ---------
    prep16 = prepare_params(params)                                # bf16 compute
    logits16, (h16, c16) = fwd(prep16, input_ids, h, c, memory)
    jax.block_until_ready((logits16, h16, c16))
    assert logits16.shape == (B, V) and h16.shape == (3, B, H) and c16.shape == (3, B, H)
    assert float(jnp.max(jnp.abs(logits16 - ref_logits))) < 1e-1
    assert float(jnp.max(jnp.abs(h16 - ref_h))) < 5e-2
    assert float(jnp.max(jnp.abs(c16 - ref_c))) < 5e-2

    print("KERNEL_OK")
</pallas_src>

<mosaic_0001>
module attributes {stable_mosaic.version = 11 : i64} {
  func.func @_decoder_step_kernel(%arg0: i32, %arg1: memref<2xi32, #tpu.memory_space<smem>>, %arg2: memref<64x32xf32, #tpu.memory_space<any>>, %arg3: memref<2x8x32xf32, #tpu.memory_space<vmem>>, %arg4: memref<3x2x32xf32, #tpu.memory_space<vmem>>, %arg5: memref<3x2x32xf32, #tpu.memory_space<vmem>>, %arg6: memref<32x32xf32, #tpu.memory_space<vmem>>, %arg7: memref<32x128xf32, #tpu.memory_space<vmem>>, %arg8: memref<32x128xf32, #tpu.memory_space<vmem>>, %arg9: memref<32x128xf32, #tpu.memory_space<vmem>>, %arg10: memref<1x128xf32, #tpu.memory_space<vmem>>, %arg11: memref<2x32x128xf32, #tpu.memory_space<any>>, %arg12: memref<1x128xf32, #tpu.memory_space<vmem>>, %arg13: memref<2x32x128xf32, #tpu.memory_space<any>>, %arg14: memref<1x128xf32, #tpu.memory_space<vmem>>, %arg15: memref<32x128xf32, #tpu.memory_space<vmem>>, %arg16: memref<1x128xf32, #tpu.memory_space<vmem>>, %arg17: memref<2x128xf32, #tpu.memory_space<vmem>>, %arg18: memref<3x2x32xf32, #tpu.memory_space<vmem>>, %arg19: memref<3x2x32xf32, #tpu.memory_space<vmem>>, %arg20: memref<2x32xf32, #tpu.memory_space<vmem>>, %arg21: memref<2x32xf32, #tpu.memory_space<vmem>>, %arg22: memref<2x32x128xf32, #tpu.memory_space<vmem>>, %arg23: memref<2x32x128xf32, #tpu.memory_space<vmem>>, %arg24: memref<2x!tpu.dma_semaphore, #tpu.memory_space<semaphore_mem>>, %arg25: memref<2x!tpu.dma_semaphore, #tpu.memory_space<semaphore_mem>>) attributes {dimension_semantics = [#tpu.dimension_semantics<arbitrary>], iteration_bounds = array<i64: 1>, scalar_prefetch = 1 : i64, scratch_operands = 6 : i64, tpu.core_type = #tpu.core_type<tc>, window_params = [{}, {pipeline_mode = #tpu.pipeline_mode<synchronous>, transform_indices = @transform_1, window_bounds = array<i64: 2, 8, 32>}, {pipeline_mode = #tpu.pipeline_mode<synchronous>, transform_indices = @transform_2, window_bounds = array<i64: 3, 2, 32>}, {pipeline_mode = #tpu.pipeline_mode<synchronous>, transform_indices = @transform_3, window_bounds = array<i64: 3, 2, 32>}, {pipeline_mode = #tpu.pipeline_mode<synchronous>, transform_indices = @transform_4, window_bounds = array<i64: 32, 32>}, {pipeline_mode = #tpu.pipeline_mode<synchronous>, transform_indices = @transform_5, window_bounds = array<i64: 32, 128>}, {pipeline_mode = #tpu.pipeline_mode<synchronous>, transform_indices = @transform_6, window_bounds = array<i64: 32, 128>}, {pipeline_mode = #tpu.pipeline_mode<synchronous>, transform_indices = @transform_7, window_bounds = array<i64: 32, 128>}, {pipeline_mode = #tpu.pipeline_mode<synchronous>, transform_indices = @transform_8, window_bounds = array<i64: 1, 128>}, {}, {pipeline_mode = #tpu.pipeline_mode<synchronous>, transform_indices = @transform_10, window_bounds = array<i64: 1, 128>}, {}, {pipeline_mode = #tpu.pipeline_mode<synchronous>, transform_indices = @transform_12, window_bounds = array<i64: 1, 128>}, {transform_indices = @transform_13, window_bounds = array<i64: 32, 128>}, {transform_indices = @transform_14, window_bounds = array<i64: 1, 128>}, {transform_indices = @transform_15, window_bounds = array<i64: 2, 128>}, {pipeline_mode = #tpu.pipeline_mode<synchronous>, transform_indices = @transform_16, window_bounds = array<i64: 3, 2, 32>}, {pipeline_mode = #tpu.pipeline_mode<synchronous>, transform_indices = @transform_17, window_bounds = array<i64: 3, 2, 32>}]} {
    %c0_i32 = arith.constant 0 : i32
    %0 = arith.cmpi eq, %arg0, %c0_i32 : i32
    %1 = arith.extui %0 : i1 to i32
    %c0_i32_0 = arith.constant 0 : i32
    %2 = arith.cmpi ne, %1, %c0_i32_0 : i32
    scf.if %2 {
      %c0_8 = arith.constant 0 : index
      %10 = memref.load %arg1[%c0_8] : memref<2xi32, #tpu.memory_space<smem>>
      %c1 = arith.constant 1 : index
      %11 = memref.load %arg1[%c1] : memref<2xi32, #tpu.memory_space<smem>>
      %c0_i32_9 = arith.constant 0 : i32
      %c0_i32_10 = arith.constant 0 : i32
      %12 = tpu.memref_slice %arg2[%10, %c0_i32_10] : memref<64x32xf32, #tpu.memory_space<any>> -> memref<1x32xf32, #tpu.memory_space<any>>
      %c0_i32_11 = arith.constant 0 : i32
      %c0_i32_12 = arith.constant 0 : i32
      %13 = tpu.memref_slice %arg20[%c0_i32_11, %c0_i32_12] : memref<2x32xf32, #tpu.memory_space<vmem>> -> memref<1x32xf32, #tpu.memory_space<vmem>>
      %14 = tpu.memref_slice %arg24[%c0_i32_9] : memref<2x!tpu.dma_semaphore, #tpu.memory_space<semaphore_mem>> -> memref<1x!tpu.dma_semaphore, #tpu.memory_space<semaphore_mem>>
      %15 = tpu.memref_squeeze %14 : memref<1x!tpu.dma_semaphore, #tpu.memory_space<semaphore_mem>> -> memref<!tpu.dma_semaphore, #tpu.memory_space<semaphore_mem>>
      tpu.enqueue_dma source(%12 : memref<1x32xf32, #tpu.memory_space<any>>) target(%13 : memref<1x32xf32, #tpu.memory_space<vmem>>) target_semaphore(%15 : memref<!tpu.dma_semaphore, #tpu.memory_space<semaphore_mem>>)
      %c1_i32 = arith.constant 1 : i32
      %c0_i32_13 = arith.constant 0 : i32
      %16 = tpu.memref_slice %arg2[%11, %c0_i32_13] : memref<64x32xf32, #tpu.memory_space<any>> -> memref<1x32xf32, #tpu.memory_space<any>>
      %c1_i32_14 = arith.constant 1 : i32
      %c0_i32_15 = arith.constant 0 : i32
      %17 = tpu.memref_slice %arg20[%c1_i32_14, %c0_i32_15] : memref<2x32xf32, #tpu.memory_space<vmem>> -> memref<1x32xf32, #tpu.memory_space<vmem>>
      %18 = tpu.memref_slice %arg24[%c1_i32] : memref<2x!tpu.dma_semaphore, #tpu.memory_space<semaphore_mem>> -> memref<1x!tpu.dma_semaphore, #tpu.memory_space<semaphore_mem>>
      %19 = tpu.memref_squeeze %18 : memref<1x!tpu.dma_semaphore, #tpu.memory_space<semaphore_mem>> -> memref<!tpu.dma_semaphore, #tpu.memory_space<semaphore_mem>>
      tpu.enqueue_dma source(%16 : memref<1x32xf32, #tpu.memory_space<any>>) target(%17 : memref<1x32xf32, #tpu.memory_space<vmem>>) target_semaphore(%19 : memref<!tpu.dma_semaphore, #tpu.memory_space<semaphore_mem>>)
      %c0_i32_16 = arith.constant 0 : i32
      %20 = tpu.memref_slice %arg25[%c0_i32_16] : memref<2x!tpu.dma_semaphore, #tpu.memory_space<semaphore_mem>> -> memref<1x!tpu.dma_semaphore, #tpu.memory_space<semaphore_mem>>
      %21 = tpu.memref_squeeze %20 : memref<1x!tpu.dma_semaphore, #tpu.memory_space<semaphore_mem>> -> memref<!tpu.dma_semaphore, #tpu.memory_space<semaphore_mem>>
      tpu.enqueue_dma source(%arg11 : memref<2x32x128xf32, #tpu.memory_space<any>>) target(%arg22 : memref<2x32x128xf32, #tpu.memory_space<vmem>>) target_semaphore(%21 : memref<!tpu.dma_semaphore, #tpu.memory_space<semaphore_mem>>)
      %c1_i32_17 = arith.constant 1 : i32
      %22 = tpu.memref_slice %arg25[%c1_i32_17] : memref<2x!tpu.dma_semaphore, #tpu.memory_space<semaphore_mem>> -> memref<1x!tpu.dma_semaphore, #tpu.memory_space<semaphore_mem>>
      %23 = tpu.memref_squeeze %22 : memref<1x!tpu.dma_semaphore, #tpu.memory_space<semaphore_mem>> -> memref<!tpu.dma_semaphore, #tpu.memory_space<semaphore_mem>>
      tpu.enqueue_dma source(%arg13 : memref<2x32x128xf32, #tpu.memory_space<any>>) target(%arg23 : memref<2x32x128xf32, #tpu.memory_space<vmem>>) target_semaphore(%23 : memref<!tpu.dma_semaphore, #tpu.memory_space<semaphore_mem>>)
      %c0_18 = arith.constant 0 : index
      %c0_19 = arith.constant 0 : index
      %c0_20 = arith.constant 0 : index
      %24 = vector.load %arg4[%c0_18, %c0_19, %c0_20] : memref<3x2x32xf32, #tpu.memory_space<vmem>>, vector<1x2x32xf32>
      %25 = vector.shape_cast %24 : vector<1x2x32xf32> to vector<2x32xf32>
      %c0_21 = arith.constant 0 : index
      %c0_22 = arith.constant 0 : index
      %26 = vector.load %arg6[%c0_21, %c0_22] : memref<32x32xf32, #tpu.memory_space<vmem>>, vector<32x32xf32>
      %cst_23 = arith.constant dense<0.000000e+00> : vector<2x32xf32>
      %27 = tpu.matmul %25, %26, %cst_23 {dimension_numbers = #tpu.dot_dimension_numbers<[1], [0], [0], [1], [0, 0, 1, 1], [], []>} : vector<2x32xf32>, vector<32x32xf32>, vector<2x32xf32> -> vector<2x32xf32>
      %28 = vector.shape_cast %27 : vector<2x32xf32> to vector<2x1x32xf32>
      %c0_24 = arith.constant 0 : index
      %c0_25 = arith.constant 0 : index
      %c0_26 = arith.constant 0 : index
      %29 = vector.load %arg3[%c0_24, %c0_25, %c0_26] : memref<2x8x32xf32, #tpu.memory_space<vmem>>, vector<2x8x32xf32>
      "tpu.trace_start"() <{level = 10 : i32, message = "bth,bsh->bts"}> : () -> ()
      %cst_27 = arith.constant dense<0.000000e+00> : vector<2x1x8xf32>
      %30 = tpu.matmul %28, %29, %cst_27 {dimension_numbers = #tpu.dot_dimension_numbers<[2], [2], [1], [1], [0, 0, 0, 1, 1, 1], [0], [0]>} : vector<2x1x32xf32>, vector<2x8x32xf32>, vector<2x1x8xf32> -> vector<2x1x8xf32>
      "tpu.trace_stop"() : () -> ()
      %cst_28 = arith.constant dense<0xFF800000> : vector<2x1xf32>
      %31 = vector.multi_reduction <maximumf>, %30, %cst_28 [2] : vector<2x1x8xf32> to vector<2x1xf32>
      %32 = vector.shape_cast %31 : vector<2x1xf32> to vector<2x1x1xf32>
      %33 = vector.broadcast %32 : vector<2x1x1xf32> to vector<2x1x8xf32>
      %34 = arith.subf %30, %33 : vector<2x1x8xf32>
      %35 = math.exp %34 : vector<2x1x8xf32>
      %cst_29 = arith.constant dense<0.000000e+00> : vector<2x1xf32>
      %36 = vector.multi_reduction <add>, %35, %cst_29 [2] : vector<2x1x8xf32> to vector<2x1xf32>
      %37 = vector.shape_cast %36 : vector<2x1xf32> to vector<2x1x1xf32>
      %38 = tpu.reciprocal %37 {approx = true} : vector<2x1x1xf32> -> vector<2x1x1xf32>
      %39 = vector.broadcast %38 : vector<2x1x1xf32> to vector<2x1x8xf32>
      %40 = arith.mulf %35, %39 : vector<2x1x8xf32>
      %c0_30 = arith.constant 0 : index
      %c0_31 = arith.constant 0 : index
      %c0_32 = arith.constant 0 : index
      %41 = vector.load %arg3[%c0_30, %c0_31, %c0_32] : memref<2x8x32xf32, #tpu.memory_space<vmem>>, vector<2x8x32xf32>
      "tpu.trace_start"() <{level = 10 : i32, message = "bts,bsh->bth"}> : () -> ()
      %cst_33 = arith.constant dense<0.000000e+00> : vector<2x1x32xf32>
      %42 = tpu.matmul %40, %41, %cst_33 {dimension_numbers = #tpu.dot_dimension_numbers<[2], [1], [1], [2], [0, 0, 0, 1, 1, 2], [0], [0]>} : vector<2x1x8xf32>, vector<2x8x32xf32>, vector<2x1x32xf32> -> vector<2x1x32xf32>
      "tpu.trace_stop"() : () -> ()
      %43 = vector.shape_cast %42 : vector<2x1x32xf32> to vector<2x32xf32>
      %c0_i32_34 = arith.constant 0 : i32
      %c0_i32_35 = arith.constant 0 : i32
      %44 = tpu.memref_slice %arg2[%10, %c0_i32_35] : memref<64x32xf32, #tpu.memory_space<any>> -> memref<1x32xf32, #tpu.memory_space<any>>
      %c0_i32_36 = arith.constant 0 : i32
      %c0_i32_37 = arith.constant 0 : i32
      %45 = tpu.memref_slice %arg20[%c0_i32_36, %c0_i32_37] : memref<2x32xf32, #tpu.memory_space<vmem>> -> memref<1x32xf32, #tpu.memory_space<vmem>>
      %46 = tpu.memref_slice %arg24[%c0_i32_34] : memref<2x!tpu.dma_semaphore, #tpu.memory_space<semaphore_mem>> -> memref<1x!tpu.dma_semaphore, #tpu.memory_space<semaphore_mem>>
      %47 = tpu.memref_squeeze %46 : memref<1x!tpu.dma_semaphore, #tpu.memory_space<semaphore_mem>> -> memref<!tpu.dma_semaphore, #tpu.memory_space<semaphore_mem>>
      tpu.wait_dma2 semaphore(%47 : memref<!tpu.dma_semaphore, #tpu.memory_space<semaphore_mem>>) src(%44 : memref<1x32xf32, #tpu.memory_space<any>>) dst(%45 : memref<1x32xf32, #tpu.memory_space<vmem>>)
      %c1_i32_38 = arith.constant 1 : i32
      %c0_i32_39 = arith.constant 0 : i32
      %48 = tpu.memref_slice %arg2[%11, %c0_i32_39] : memref<64x32xf32, #tpu.memory_space<any>> -> memref<1x32xf32, #tpu.memory_space<any>>
      %c1_i32_40 = arith.constant 1 : i32
      %c0_i32_41 = arith.constant 0 : i32
      %49 = tpu.memref_slice %arg20[%c1_i32_40, %c0_i32_41] : memref<2x32xf32, #tpu.memory_space<vmem>> -> memref<1x32xf32, #tpu.memory_space<vmem>>
      %50 = tpu.memref_slice %arg24[%c1_i32_38] : memref<2x!tpu.dma_semaphore, #tpu.memory_space<semaphore_mem>> -> memref<1x!tpu.dma_semaphore, #tpu.memory_space<semaphore_mem>>
      %51 = tpu.memref_squeeze %50 : memref<1x!tpu.dma_semaphore, #tpu.memory_space<semaphore_mem>> -> memref<!tpu.dma_semaphore, #tpu.memory_space<semaphore_mem>>
      tpu.wait_dma2 semaphore(%51 : memref<!tpu.dma_semaphore, #tpu.memory_space<semaphore_mem>>) src(%48 : memref<1x32xf32, #tpu.memory_space<any>>) dst(%49 : memref<1x32xf32, #tpu.memory_space<vmem>>)
      %c0_42 = arith.constant 0 : index
      %c0_43 = arith.constant 0 : index
      %52 = vector.load %arg20[%c0_42, %c0_43] : memref<2x32xf32, #tpu.memory_space<vmem>>, vector<2x32xf32>
      %c0_44 = arith.constant 0 : index
      %c0_45 = arith.constant 0 : index
      %53 = vector.load %arg7[%c0_44, %c0_45] : memref<32x128xf32, #tpu.memory_space<vmem>>, vector<32x128xf32>
      %cst_46 = arith.constant dense<0.000000e+00> : vector<2x128xf32>
      %54 = tpu.matmul %52, %53, %cst_46 {dimension_numbers = #tpu.dot_dimension_numbers<[1], [0], [0], [1], [0, 0, 1, 1], [], []>} : vector<2x32xf32>, vector<32x128xf32>, vector<2x128xf32> -> vector<2x128xf32>
      %c0_47 = arith.constant 0 : index
      %c0_48 = arith.constant 0 : index
      %55 = vector.load %arg8[%c0_47, %c0_48] : memref<32x128xf32, #tpu.memory_space<vmem>>, vector<32x128xf32>
      %cst_49 = arith.constant dense<0.000000e+00> : vector<2x128xf32>
      %56 = tpu.matmul %43, %55, %cst_49 {dimension_numbers = #tpu.dot_dimension_numbers<[1], [0], [0], [1], [0, 0, 1, 1], [], []>} : vector<2x32xf32>, vector<32x128xf32>, vector<2x128xf32> -> vector<2x128xf32>
      %57 = arith.addf %54, %56 : vector<2x128xf32>
      %c0_50 = arith.constant 0 : index
      %c0_51 = arith.constant 0 : index
      %c0_52 = arith.constant 0 : index
      %58 = vector.load %arg4[%c0_50, %c0_51, %c0_52] : memref<3x2x32xf32, #tpu.memory_space<vmem>>, vector<1x2x32xf32>
      %59 = vector.shape_cast %58 : vector<1x2x32xf32> to vector<2x32xf32>
      %c0_53 = arith.constant 0 : index
      %c0_54 = arith.constant 0 : index
      %60 = vector.load %arg9[%c0_53, %c0_54] : memref<32x128xf32, #tpu.memory_space<vmem>>, vector<32x128xf32>
      %cst_55 = arith.constant dense<0.000000e+00> : vector<2x128xf32>
      %61 = tpu.matmul %59, %60, %cst_55 {dimension_numbers = #tpu.dot_dimension_numbers<[1], [0], [0], [1], [0, 0, 1, 1], [], []>} : vector<2x32xf32>, vector<32x128xf32>, vector<2x128xf32> -> vector<2x128xf32>
      %62 = arith.addf %57, %61 : vector<2x128xf32>
      %c0_56 = arith.constant 0 : index
      %c0_57 = arith.constant 0 : index
      %63 = vector.load %arg10[%c0_56, %c0_57] : memref<1x128xf32, #tpu.memory_space<vmem>>, vector<1x128xf32>
      %64 = vector.broadcast %63 : vector<1x128xf32> to vector<2x128xf32>
      %65 = arith.addf %62, %64 : vector<2x128xf32>
      %c0_58 = arith.constant 0 : index
      %c0_59 = arith.constant 0 : index
      %c0_60 = arith.constant 0 : index
      %66 = vector.load %arg5[%c0_58, %c0_59, %c0_60] : memref<3x2x32xf32, #tpu.memory_space<vmem>>, vector<1x2x32xf32>
      %67 = vector.shape_cast %66 : vector<1x2x32xf32> to vector<2x32xf32>
      %68 = vector.extract_strided_slice %65 {offsets = [0, 0], sizes = [2, 32], strides = [1, 1]} : vector<2x128xf32> to vector<2x32xf32>
      %69 = arith.negf %68 : vector<2x32xf32>
      %70 = math.exp %69 : vector<2x32xf32>
      %cst_61 = arith.constant 1.000000e+00 : f32
      %71 = vector.broadcast %cst_61 : f32 to vector<2x32xf32>
      %72 = arith.addf %71, %70 : vector<2x32xf32>
      %73 = arith.divf %71, %72 : vector<2x32xf32>
      %74 = vector.extract_strided_slice %65 {offsets = [0, 32], sizes = [2, 32], strides = [1, 1]} : vector<2x128xf32> to vector<2x32xf32>
      %75 = arith.negf %74 : vector<2x32xf32>
      %76 = math.exp %75 : vector<2x32xf32>
      %cst_62 = arith.constant 1.000000e+00 : f32
      %77 = vector.broadcast %cst_62 : f32 to vector<2x32xf32>
      %78 = arith.addf %77, %76 : vector<2x32xf32>
      %79 = arith.divf %77, %78 : vector<2x32xf32>
      %80 = vector.extract_strided_slice %65 {offsets = [0, 64], sizes = [2, 32], strides = [1, 1]} : vector<2x128xf32> to vector<2x32xf32>
      %81 = math.tanh %80 : vector<2x32xf32>
      %82 = vector.extract_strided_slice %65 {offsets = [0, 96], sizes = [2, 32], strides = [1, 1]} : vector<2x128xf32> to vector<2x32xf32>
      %83 = arith.negf %82 : vector<2x32xf32>
      %84 = math.exp %83 : vector<2x32xf32>
      %cst_63 = arith.constant 1.000000e+00 : f32
      %85 = vector.broadcast %cst_63 : f32 to vector<2x32xf32>
      %86 = arith.addf %85, %84 : vector<2x32xf32>
      %87 = arith.divf %85, %86 : vector<2x32xf32>
      %88 = arith.mulf %79, %67 : vector<2x32xf32>
      %89 = arith.mulf %73, %81 : vector<2x32xf32>
      %90 = arith.addf %88, %89 : vector<2x32xf32>
      %91 = math.tanh %90 : vector<2x32xf32>
      %92 = arith.mulf %87, %91 : vector<2x32xf32>
      %c0_i32_64 = arith.constant 0 : i32
      %93 = tpu.memref_slice %arg25[%c0_i32_64] : memref<2x!tpu.dma_semaphore, #tpu.memory_space<semaphore_mem>> -> memref<1x!tpu.dma_semaphore, #tpu.memory_space<semaphore_mem>>
      %94 = tpu.memref_squeeze %93 : memref<1x!tpu.dma_semaphore, #tpu.memory_space<semaphore_mem>> -> memref<!tpu.dma_semaphore, #tpu.memory_space<semaphore_mem>>
      tpu.wait_dma2 semaphore(%94 : memref<!tpu.dma_semaphore, #tpu.memory_space<semaphore_mem>>) src(%arg11 : memref<2x32x128xf32, #tpu.memory_space<any>>) dst(%arg22 : memref<2x32x128xf32, #tpu.memory_space<vmem>>)
      %c0_65 = arith.constant 0 : index
      %c0_66 = arith.constant 0 : index
      %c0_67 = arith.constant 0 : index
      %95 = vector.load %arg22[%c0_65, %c0_66, %c0_67] : memref<2x32x128xf32, #tpu.memory_space<vmem>>, vector<1x32x128xf32>
      %96 = vector.shape_cast %95 : vector<1x32x128xf32> to vector<32x128xf32>
      %cst_68 = arith.constant dense<0.000000e+00> : vector<2x128xf32>
      %97 = tpu.matmul %92, %96, %cst_68 {dimension_numbers = #tpu.dot_dimension_numbers<[1], [0], [0], [1], [0, 0, 1, 1], [], []>} : vector<2x32xf32>, vector<32x128xf32>, vector<2x128xf32> -> vector<2x128xf32>
      %c1_69 = arith.constant 1 : index
      %c0_70 = arith.constant 0 : index
      %c0_71 = arith.constant 0 : index
      %98 = vector.load %arg4[%c1_69, %c0_70, %c0_71] : memref<3x2x32xf32, #tpu.memory_space<vmem>>, vector<1x2x32xf32>
      %99 = vector.shape_cast %98 : vector<1x2x32xf32> to vector<2x32xf32>
      %c1_72 = arith.constant 1 : index
      %c0_73 = arith.constant 0 : index
      %c0_74 = arith.constant 0 : index
      %100 = vector.load %arg22[%c1_72, %c0_73, %c0_74] : memref<2x32x128xf32, #tpu.memory_space<vmem>>, vector<1x32x128xf32>
      %101 = vector.shape_cast %100 : vector<1x32x128xf32> to vector<32x128xf32>
      %cst_75 = arith.constant dense<0.000000e+00> : vector<2x128xf32>
      %102 = tpu.matmul %99, %101, %cst_75 {dimension_numbers = #tpu.dot_dimension_numbers<[1], [0], [0], [1], [0, 0, 1, 1], [], []>} : vector<2x32xf32>, vector<32x128xf32>, vector<2x128xf32> -> vector<2x128xf32>
      %103 = arith.addf %97, %102 : vector<2x128xf32>
      %c0_76 = arith.constant 0 : index
      %c0_77 = arith.constant 0 : index
      %104 = vector.load %arg12[%c0_76, %c0_77] : memref<1x128xf32, #tpu.memory_space<vmem>>, vector<1x128xf32>
      %105 = vector.broadcast %104 : vector<1x128xf32> to vector<2x128xf32>
      %106 = arith.addf %103, %105 : vector<2x128xf32>
      %c1_78 = arith.constant 1 : index
      %c0_79 = arith.constant 0 : index
      %c0_80 = arith.constant 0 : index
      %107 = vector.load %arg5[%c1_78, %c0_79, %c0_80] : memref<3x2x32xf32, #tpu.memory_space<vmem>>, vector<1x2x32xf32>
      %108 = vector.shape_cast %107 : vector<1x2x32xf32> to vector<2x32xf32>
      %109 = vector.extract_strided_slice %106 {offsets = [0, 0], sizes = [2, 32], strides = [1, 1]} : vector<2x128xf32> to vector<2x32xf32>
      %110 = arith.negf %109 : vector<2x32xf32>
      %111 = math.exp %110 : vector<2x32xf32>
      %cst_81 = arith.constant 1.000000e+00 : f32
      %112 = vector.broadcast %cst_81 : f32 to vector<2x32xf32>
      %113 = arith.addf %112, %111 : vector<2x32xf32>
      %114 = arith.divf %112, %113 : vector<2x32xf32>
      %115 = vector.extract_strided_slice %106 {offsets = [0, 32], sizes = [2, 32], strides = [1, 1]} : vector<2x128xf32> to vector<2x32xf32>
      %116 = arith.negf %115 : vector<2x32xf32>
      %117 = math.exp %116 : vector<2x32xf32>
      %cst_82 = arith.constant 1.000000e+00 : f32
      %118 = vector.broadcast %cst_82 : f32 to vector<2x32xf32>
      %119 = arith.addf %118, %117 : vector<2x32xf32>
      %120 = arith.divf %118, %119 : vector<2x32xf32>
      %121 = vector.extract_strided_slice %106 {offsets = [0, 64], sizes = [2, 32], strides = [1, 1]} : vector<2x128xf32> to vector<2x32xf32>
      %122 = math.tanh %121 : vector<2x32xf32>
      %123 = vector.extract_strided_slice %106 {offsets = [0, 96], sizes = [2, 32], strides = [1, 1]} : vector<2x128xf32> to vector<2x32xf32>
      %124 = arith.negf %123 : vector<2x32xf32>
      %125 = math.exp %124 : vector<2x32xf32>
      %cst_83 = arith.constant 1.000000e+00 : f32
      %126 = vector.broadcast %cst_83 : f32 to vector<2x32xf32>
      %127 = arith.addf %126, %125 : vector<2x32xf32>
      %128 = arith.divf %126, %127 : vector<2x32xf32>
      %129 = arith.mulf %120, %108 : vector<2x32xf32>
      %130 = arith.mulf %114, %122 : vector<2x32xf32>
      %131 = arith.addf %129, %130 : vector<2x32xf32>
      %132 = math.tanh %131 : vector<2x32xf32>
      %133 = arith.mulf %128, %132 : vector<2x32xf32>
      %c1_i32_84 = arith.constant 1 : i32
      %134 = tpu.memref_slice %arg25[%c1_i32_84] : memref<2x!tpu.dma_semaphore, #tpu.memory_space<semaphore_mem>> -> memref<1x!tpu.dma_semaphore, #tpu.memory_space<semaphore_mem>>
      %135 = tpu.memref_squeeze %134 : memref<1x!tpu.dma_semaphore, #tpu.memory_space<semaphore_mem>> -> memref<!tpu.dma_semaphore, #tpu.memory_space<semaphore_mem>>
      tpu.wait_dma2 semaphore(%135 : memref<!tpu.dma_semaphore, #tpu.memory_space<semaphore_mem>>) src(%arg13 : memref<2x32x128xf32, #tpu.memory_space<any>>) dst(%arg23 : memref<2x32x128xf32, #tpu.memory_space<vmem>>)
      %c0_85 = arith.constant 0 : index
      %c0_86 = arith.constant 0 : index
      %c0_87 = arith.constant 0 : index
      %136 = vector.load %arg23[%c0_85, %c0_86, %c0_87] : memref<2x32x128xf32, #tpu.memory_space<vmem>>, vector<1x32x128xf32>
      %137 = vector.shape_cast %136 : vector<1x32x128xf32> to vector<32x128xf32>
      %cst_88 = arith.constant dense<0.000000e+00> : vector<2x128xf32>
      %138 = tpu.matmul %133, %137, %cst_88 {dimension_numbers = #tpu.dot_dimension_numbers<[1], [0], [0], [1], [0, 0, 1, 1], [], []>} : vector<2x32xf32>, vector<32x128xf32>, vector<2x128xf32> -> vector<2x128xf32>
      %c2 = arith.constant 2 : index
      %c0_89 = arith.constant 0 : index
      %c0_90 = arith.constant 0 : index
      %139 = vector.load %arg4[%c2, %c0_89, %c0_90] : memref<3x2x32xf32, #tpu.memory_space<vmem>>, vector<1x2x32xf32>
      %140 = vector.shape_cast %139 : vector<1x2x32xf32> to vector<2x32xf32>
      %c1_91 = arith.constant 1 : index
      %c0_92 = arith.constant 0 : index
      %c0_93 = arith.constant 0 : index
      %141 = vector.load %arg23[%c1_91, %c0_92, %c0_93] : memref<2x32x128xf32, #tpu.memory_space<vmem>>, vector<1x32x128xf32>
      %142 = vector.shape_cast %141 : vector<1x32x128xf32> to vector<32x128xf32>
      %cst_94 = arith.constant dense<0.000000e+00> : vector<2x128xf32>
      %143 = tpu.matmul %140, %142, %cst_94 {dimension_numbers = #tpu.dot_dimension_numbers<[1], [0], [0], [1], [0, 0, 1, 1], [], []>} : vector<2x32xf32>, vector<32x128xf32>, vector<2x128xf32> -> vector<2x128xf32>
      %144 = arith.addf %138, %143 : vector<2x128xf32>
      %c0_95 = arith.constant 0 : index
      %c0_96 = arith.constant 0 : index
      %145 = vector.load %arg14[%c0_95, %c0_96] : memref<1x128xf32, #tpu.memory_space<vmem>>, vector<1x128xf32>
      %146 = vector.broadcast %145 : vector<1x128xf32> to vector<2x128xf32>
      %147 = arith.addf %144, %146 : vector<2x128xf32>
      %c2_97 = arith.constant 2 : index
      %c0_98 = arith.constant 0 : index
      %c0_99 = arith.constant 0 : index
      %148 = vector.load %arg5[%c2_97, %c0_98, %c0_99] : memref<3x2x32xf32, #tpu.memory_space<vmem>>, vector<1x2x32xf32>
      %149 = vector.shape_cast %148 : vector<1x2x32xf32> to vector<2x32xf32>
      %150 = vector.extract_strided_slice %147 {offsets = [0, 0], sizes = [2, 32], strides = [1, 1]} : vector<2x128xf32> to vector<2x32xf32>
      %151 = arith.negf %150 : vector<2x32xf32>
      %152 = math.exp %151 : vector<2x32xf32>
      %cst_100 = arith.constant 1.000000e+00 : f32
      %153 = vector.broadcast %cst_100 : f32 to vector<2x32xf32>
      %154 = arith.addf %153, %152 : vector<2x32xf32>
      %155 = arith.divf %153, %154 : vector<2x32xf32>
      %156 = vector.extract_strided_slice %147 {offsets = [0, 32], sizes = [2, 32], strides = [1, 1]} : vector<2x128xf32> to vector<2x32xf32>
      %157 = arith.negf %156 : vector<2x32xf32>
      %158 = math.exp %157 : vector<2x32xf32>
      %cst_101 = arith.constant 1.000000e+00 : f32
      %159 = vector.broadcast %cst_101 : f32 to vector<2x32xf32>
      %160 = arith.addf %159, %158 : vector<2x32xf32>
      %161 = arith.divf %159, %160 : vector<2x32xf32>
      %162 = vector.extract_strided_slice %147 {offsets = [0, 64], sizes = [2, 32], strides = [1, 1]} : vector<2x128xf32> to vector<2x32xf32>
      %163 = math.tanh %162 : vector<2x32xf32>
      %164 = vector.extract_strided_slice %147 {offsets = [0, 96], sizes = [2, 32], strides = [1, 1]} : vector<2x128xf32> to vector<2x32xf32>
      %165 = arith.negf %164 : vector<2x32xf32>
      %166 = math.exp %165 : vector<2x32xf32>
      %cst_102 = arith.constant 1.000000e+00 : f32
      %167 = vector.broadcast %cst_102 : f32 to vector<2x32xf32>
      %168 = arith.addf %167, %166 : vector<2x32xf32>
      %169 = arith.divf %167, %168 : vector<2x32xf32>
      %170 = arith.mulf %161, %149 : vector<2x32xf32>
      %171 = arith.mulf %155, %163 : vector<2x32xf32>
      %172 = arith.addf %170, %171 : vector<2x32xf32>
      %173 = math.tanh %172 : vector<2x32xf32>
      %174 = arith.mulf %169, %173 : vector<2x32xf32>
      %c0_103 = arith.constant 0 : index
      %c0_104 = arith.constant 0 : index
      %c0_105 = arith.constant 0 : index
      %175 = vector.load %arg18[%c0_103, %c0_104, %c0_105] : memref<3x2x32xf32, #tpu.memory_space<vmem>>, vector<1x2x32xf32>
      %176 = vector.shape_cast %175 : vector<1x2x32xf32> to vector<2x32xf32>
      %177 = vector.shape_cast %92 : vector<2x32xf32> to vector<1x2x32xf32>
      tpu.vector_store %arg18[%c0_103, %c0_104, %c0_105], %177 {strides = array<i32>} : memref<3x2x32xf32, #tpu.memory_space<vmem>>, vector<1x2x32xf32>,
      %c1_106 = arith.constant 1 : index
      %c0_107 = arith.constant 0 : index
      %c0_108 = arith.constant 0 : index
      %178 = vector.load %arg18[%c1_106, %c0_107, %c0_108] : memref<3x2x32xf32, #tpu.memory_space<vmem>>, vector<1x2x32xf32>
      %179 = vector.shape_cast %178 : vector<1x2x32xf32> to vector<2x32xf32>
      %180 = vector.shape_cast %133 : vector<2x32xf32> to vector<1x2x32xf32>
      tpu.vector_store %arg18[%c1_106, %c0_107, %c0_108], %180 {strides = array<i32>} : memref<3x2x32xf32, #tpu.memory_space<vmem>>, vector<1x2x32xf32>,
      %c2_109 = arith.constant 2 : index
      %c0_110 = arith.constant 0 : index
      %c0_111 = arith.constant 0 : index
      %181 = vector.load %arg18[%c2_109, %c0_110, %c0_111] : memref<3x2x32xf32, #tpu.memory_space<vmem>>, vector<1x2x32xf32>
      %182 = vector.shape_cast %181 : vector<1x2x32xf32> to vector<2x32xf32>
      %183 = vector.shape_cast %174 : vector<2x32xf32> to vector<1x2x32xf32>
      tpu.vector_store %arg18[%c2_109, %c0_110, %c0_111], %183 {strides = array<i32>} : memref<3x2x32xf32, #tpu.memory_space<vmem>>, vector<1x2x32xf32>,
      %c0_112 = arith.constant 0 : index
      %c0_113 = arith.constant 0 : index
      %c0_114 = arith.constant 0 : index
      %184 = vector.load %arg19[%c0_112, %c0_113, %c0_114] : memref<3x2x32xf32, #tpu.memory_space<vmem>>, vector<1x2x32xf32>
      %185 = vector.shape_cast %184 : vector<1x2x32xf32> to vector<2x32xf32>
      %186 = vector.shape_cast %90 : vector<2x32xf32> to vector<1x2x32xf32>
      tpu.vector_store %arg19[%c0_112, %c0_113, %c0_114], %186 {strides = array<i32>} : memref<3x2x32xf32, #tpu.memory_space<vmem>>, vector<1x2x32xf32>,
      %c1_115 = arith.constant 1 : index
      %c0_116 = arith.constant 0 : index
      %c0_117 = arith.constant 0 : index
      %187 = vector.load %arg19[%c1_115, %c0_116, %c0_117] : memref<3x2x32xf32, #tpu.memory_space<vmem>>, vector<1x2x32xf32>
      %188 = vector.shape_cast %187 : vector<1x2x32xf32> to vector<2x32xf32>
      %189 = vector.shape_cast %131 : vector<2x32xf32> to vector<1x2x32xf32>
      tpu.vector_store %arg19[%c1_115, %c0_116, %c0_117], %189 {strides = array<i32>} : memref<3x2x32xf32, #tpu.memory_space<vmem>>, vector<1x2x32xf32>,
      %c2_118 = arith.constant 2 : index
      %c0_119 = arith.constant 0 : index
      %c0_120 = arith.constant 0 : index
      %190 = vector.load %arg19[%c2_118, %c0_119, %c0_120] : memref<3x2x32xf32, #tpu.memory_space<vmem>>, vector<1x2x32xf32>
      %191 = vector.shape_cast %190 : vector<1x2x32xf32> to vector<2x32xf32>
      %192 = vector.shape_cast %172 : vector<2x32xf32> to vector<1x2x32xf32>
      tpu.vector_store %arg19[%c2_118, %c0_119, %c0_120], %192 {strides = array<i32>} : memref<3x2x32xf32, #tpu.memory_space<vmem>>, vector<1x2x32xf32>,
      %c0_121 = arith.constant 0 : index
      %c0_122 = arith.constant 0 : index
      %193 = vector.load %arg21[%c0_121, %c0_122] : memref<2x32xf32, #tpu.memory_space<vmem>>, vector<2x32xf32>
      tpu.vector_store %arg21[%c0_121, %c0_122], %174 {strides = array<i32>} : memref<2x32xf32, #tpu.memory_space<vmem>>, vector<2x32xf32>,
    } else {
    }
    %c0 = arith.constant 0 : index
    %c0_1 = arith.constant 0 : index
    %3 = vector.load %arg21[%c0, %c0_1] : memref<2x32xf32, #tpu.memory_space<vmem>>, vector<2x32xf32>
    %c0_2 = arith.constant 0 : index
    %c0_3 = arith.constant 0 : index
    %4 = vector.load %arg15[%c0_2, %c0_3] : memref<32x128xf32, #tpu.memory_space<vmem>>, vector<32x128xf32>
    %cst = arith.constant dense<0.000000e+00> : vector<2x128xf32>
    %5 = tpu.matmul %3, %4, %cst {dimension_numbers = #tpu.dot_dimension_numbers<[1], [0], [0], [1], [0, 0, 1, 1], [], []>} : vector<2x32xf32>, vector<32x128xf32>, vector<2x128xf32> -> vector<2x128xf32>
    %c0_4 = arith.constant 0 : index
    %c0_5 = arith.constant 0 : index
    %6 = vector.load %arg16[%c0_4, %c0_5] : memref<1x128xf32, #tpu.memory_space<vmem>>, vector<1x128xf32>
    %7 = vector.broadcast %6 : vector<1x128xf32> to vector<2x128xf32>
    %8 = arith.addf %5, %7 : vector<2x128xf32>
    %c0_6 = arith.constant 0 : index
    %c0_7 = arith.constant 0 : index
    %9 = vector.load %arg17[%c0_6, %c0_7] : memref<2x128xf32, #tpu.memory_space<vmem>>, vector<2x128xf32>
    tpu.vector_store %arg17[%c0_6, %c0_7], %8 {strides = array<i32>} : memref<2x128xf32, #tpu.memory_space<vmem>>, vector<2x128xf32>,
    return
  }
  func.func @transform_1(%arg0: i32, %arg1: memref<2xi32, #tpu.memory_space<smem>>) -> (i32, i32, i32) {
    %c0_i32 = arith.constant 0 : i32
    %c0_i32_0 = arith.constant 0 : i32
    %c0_i32_1 = arith.constant 0 : i32
    %c0_i32_2 = arith.constant 0 : i32
    return %c0_i32, %c0_i32_0, %c0_i32_1 : i32, i32, i32
  }
  func.func @transform_2(%arg0: i32, %arg1: memref<2xi32, #tpu.memory_space<smem>>) -> (i32, i32, i32) {
    %c0_i32 = arith.constant 0 : i32
    %c0_i32_0 = arith.constant 0 : i32
    %c0_i32_1 = arith.constant 0 : i32
    %c0_i32_2 = arith.constant 0 : i32
    return %c0_i32, %c0_i32_0, %c0_i32_1 : i32, i32, i32
  }
  func.func @transform_3(%arg0: i32, %arg1: memref<2xi32, #tpu.memory_space<smem>>) -> (i32, i32, i32) {
    %c0_i32 = arith.constant 0 : i32
    %c0_i32_0 = arith.constant 0 : i32
    %c0_i32_1 = arith.constant 0 : i32
    %c0_i32_2 = arith.constant 0 : i32
    return %c0_i32, %c0_i32_0, %c0_i32_1 : i32, i32, i32
  }
  func.func @transform_4(%arg0: i32, %arg1: memref<2xi32, #tpu.memory_space<smem>>) -> (i32, i32) {
    %c0_i32 = arith.constant 0 : i32
    %c0_i32_0 = arith.constant 0 : i32
    %c0_i32_1 = arith.constant 0 : i32
    return %c0_i32, %c0_i32_0 : i32, i32
  }
  func.func @transform_5(%arg0: i32, %arg1: memref<2xi32, #tpu.memory_space<smem>>) -> (i32, i32) {
    %c0_i32 = arith.constant 0 : i32
    %c0_i32_0 = arith.constant 0 : i32
    %c0_i32_1 = arith.constant 0 : i32
    return %c0_i32, %c0_i32_0 : i32, i32
  }
  func.func @transform_6(%arg0: i32, %arg1: memref<2xi32, #tpu.memory_space<smem>>) -> (i32, i32) {
    %c0_i32 = arith.constant 0 : i32
    %c0_i32_0 = arith.constant 0 : i32
    %c0_i32_1 = arith.constant 0 : i32
    return %c0_i32, %c0_i32_0 : i32, i32
  }
  func.func @transform_7(%arg0: i32, %arg1: memref<2xi32, #tpu.memory_space<smem>>) -> (i32, i32) {
    %c0_i32 = arith.constant 0 : i32
    %c0_i32_0 = arith.constant 0 : i32
    %c0_i32_1 = arith.constant 0 : i32
    return %c0_i32, %c0_i32_0 : i32, i32
  }
  func.func @transform_8(%arg0: i32, %arg1: memref<2xi32, #tpu.memory_space<smem>>) -> (i32, i32) {
    %c0_i32 = arith.constant 0 : i32
    %c0_i32_0 = arith.constant 0 : i32
    %c0_i32_1 = arith.constant 0 : i32
    return %c0_i32, %c0_i32_0 : i32, i32
  }
  func.func @transform_10(%arg0: i32, %arg1: memref<2xi32, #tpu.memory_space<smem>>) -> (i32, i32) {
    %c0_i32 = arith.constant 0 : i32
    %c0_i32_0 = arith.constant 0 : i32
    %c0_i32_1 = arith.constant 0 : i32
    return %c0_i32, %c0_i32_0 : i32, i32
  }
  func.func @transform_12(%arg0: i32, %arg1: memref<2xi32, #tpu.memory_space<smem>>) -> (i32, i32) {
    %c0_i32 = arith.constant 0 : i32
    %c0_i32_0 = arith.constant 0 : i32
    %c0_i32_1 = arith.constant 0 : i32
    return %c0_i32, %c0_i32_0 : i32, i32
  }
  func.func @transform_13(%arg0: i32, %arg1: memref<2xi32, #tpu.memory_space<smem>>) -> (i32, i32) {
    %c0_i32 = arith.constant 0 : i32
    %c0_i32_0 = arith.constant 0 : i32
    return %c0_i32, %arg0 : i32, i32
  }
  func.func @transform_14(%arg0: i32, %arg1: memref<2xi32, #tpu.memory_space<smem>>) -> (i32, i32) {
    %c0_i32 = arith.constant 0 : i32
    %c0_i32_0 = arith.constant 0 : i32
    return %c0_i32, %arg0 : i32, i32
  }
  func.func @transform_15(%arg0: i32, %arg1: memref<2xi32, #tpu.memory_space<smem>>) -> (i32, i32) {
    %c0_i32 = arith.constant 0 : i32
    %c0_i32_0 = arith.constant 0 : i32
    return %c0_i32, %arg0 : i32, i32
  }
  func.func @transform_16(%arg0: i32, %arg1: memref<2xi32, #tpu.memory_space<smem>>) -> (i32, i32, i32) {
    %c0_i32 = arith.constant 0 : i32
    %c0_i32_0 = arith.constant 0 : i32
    %c0_i32_1 = arith.constant 0 : i32
    %c0_i32_2 = arith.constant 0 : i32
    return %c0_i32, %c0_i32_0, %c0_i32_1 : i32, i32, i32
  }
  func.func @transform_17(%arg0: i32, %arg1: memref<2xi32, #tpu.memory_space<smem>>) -> (i32, i32, i32) {
    %c0_i32 = arith.constant 0 : i32
    %c0_i32_0 = arith.constant 0 : i32
    %c0_i32_1 = arith.constant 0 : i32
    %c0_i32_2 = arith.constant 0 : i32
    return %c0_i32, %c0_i32_0, %c0_i32_1 : i32, i32, i32
  }
}

</mosaic_0001>

<bundles_post_ra>
// kernel: decoder_attn_forward.1
= control target key start
LH: loop header
LB: loop body
LE: loop exit
PB: predicated region body
PF: predicated region fallthrough
CT: control target
= control target key end

     0   :  { %s2924_s0 = inlined_call_operand.vmem [shape: s32[2], index: 0, kind: input, shape index: {}]   ;;  %s2925_s1 = inlined_call_operand.vmem [shape: f32[64,32], index: 1, kind: input, shape index: {}]   ;;  %s2926_s2 = inlined_call_operand.vmem [shape: f32[2,8,32], index: 2, kind: input, shape index: {}]   ;;  %s2927_s3 = inlined_call_operand.hbm [shape: f32[3,2,32], index: 3, kind: input, shape index: {}]   ;;  %s2928_s4 = inlined_call_operand.hbm [shape: f32[3,2,32], index: 4, kind: input, shape index: {}]   ;;  %s2929_s5 = inlined_call_operand.hbm [shape: f32[32,32], index: 5, kind: input, shape index: {}]   ;;  %s2930_s6 = inlined_call_operand.hbm [shape: f32[32,128], index: 6, kind: input, shape index: {}]   ;;  %s2931_s7 = inlined_call_operand.hbm [shape: f32[32,128], index: 7, kind: input, shape index: {}]   ;;  %s2932_s8 = inlined_call_operand.hbm [shape: f32[32,128], index: 8, kind: input, shape index: {}]   ;;  %s2933_s9 = inlined_call_operand.hbm [shape: f32[1,128], index: 9, kind: input, shape index: {}]   ;;  %s2934_s10 = inlined_call_operand.vmem [shape: f32[2,32,128], index: 10, kind: input, shape index: {}]   ;;  %s2935_s11 = inlined_call_operand.hbm [shape: f32[1,128], index: 11, kind: input, shape index: {}]   ;;  %s2936_s12 = inlined_call_operand.vmem [shape: f32[2,32,128], index: 12, kind: input, shape index: {}]   ;;  %s2937_s13 = inlined_call_operand.hbm [shape: f32[1,128], index: 13, kind: input, shape index: {}]   ;;  %s2938_s14 = inlined_call_operand.hbm [shape: f32[32,128], index: 14, kind: input, shape index: {}]   ;;  %s2939_s15 = inlined_call_operand.hbm [shape: f32[1,128], index: 15, kind: input, shape index: {}]   ;;  %s2940_s16 = inlined_call_operand.hbm [shape: f32[2,128], index: 16, kind: output, shape index: {0}]   ;;  %s2941_s17 = inlined_call_operand.hbm [shape: f32[3,2,32], index: 17, kind: output, shape index: {1}]   ;;  %s2942_s18 = inlined_call_operand.hbm [shape: f32[3,2,32], index: 18, kind: output, shape index: {2}]  }
   0x1   :  { %2946 = sst [smem:[#allocation49_spill]] %s2924_s0 }
   0x2   :  { %2947 = sst [smem:[#allocation50_spill]] %s2925_s1  ;;  %s2950_s29 = sld [smem:[#allocation49_spill]] }
   0x3   :  { %2948 = sst [smem:[#allocation51_spill]] %s2926_s2 }
   0x4   :  { %2949 = sst [smem:[#allocation52_spill]] %s2936_s12 }
   0x8   :  { %s24_s12 = sshll.u32 %s2950_s29, 4  ;;  %s25_s12 = int_to_ptr.vmem [resolvable:$true] %s24_s12 }
   0x9   :  { %s2057_s30 = scalar_lea.vmem %s25_s12, 16  ;;  %p2062_p1 = scmp.lt.s32.totalorder %s25_s12, %s25_s12 }
   0xa   :  { %p2058_p0 = scmp.ne.s32.totalorder %s25_s12, %s2057_s30  ;;  %p2063_p2 = scmp.lt.s32.totalorder %s2057_s30, %s2057_s30 }
   0xc   :  { %p2064_p3 = por %p2063_p2, %p2062_p1 }
   0xe   :  { %p2065_p4 = pnand %p2064_p3, %p2058_p0 }
  0x10   :  { %2068 = shalt.err (!%p2065_p4)  }
  0x11   :  { %s2403_s0 = smov [#allocation9]  }
  0x12   :  { %27 = dma.vmem_to_smem %s25_s12, 16, %s2403_s0, [#allocation8] }
  0x13   :  { %2377 = dma.done.wait [#allocation8], 16 }
  0x14   :  { %2378 = vsyncadd [#allocation8], 4294967280 }
  0x15   :  { %29 = sfence }
  0x16   :  { %30 = vsyncpa [#allocation11], 0 }
  0x17   :  { %31 = vsyncpa [#allocation14], 0 }
  0x18   :  { %32 = vsyncpa [#allocation17], 0 }
  0x19   :  { %33 = vsyncpa [#allocation20], 0 }
  0x1a   :  { %34 = vsyncpa [#allocation23], 0 }
  0x1b   :  { %35 = vsyncpa [#allocation26], 0 }
  0x1c   :  { %36 = vsyncpa [#allocation12], 0 }
  0x1d   :  { %37 = vsyncpa [#allocation30], 0  ;;  %s2404_s19 = smov [#allocation13]   ;;  %s2069_s22 = scalar_lea.hbm %s2928_s4, 96 }
  0x1e   :  { %s57_s1 = sshll.u32 %s2404_s19, 4  ;;  %p2070_p5 = scmp.ne.s32.totalorder %s2928_s4, %s2069_s22  ;;  %s58_s1 = int_to_ptr.vmem [resolvable:$true] %s57_s1 }
  0x1f   :  { %p2073_p6 = scmp.lt.u32.totalorder %s2069_s22, %s2928_s4 }
  0x21   :  { %p2075_p7 = pnand %p2073_p6, %p2070_p5 }
  0x23   :  { %2078 = shalt.err (!%p2075_p7)
}
  0x24   :  { %s2079_s25 = scalar_lea.vmem %s58_s1, 96  ;;  %p2084_p9 = scmp.lt.s32.totalorder %s58_s1, %s58_s1 }
  0x25   :  { %p2080_p8 = scmp.ne.s32.totalorder %s58_s1, %s2079_s25  ;;  %p2085_p10 = scmp.lt.s32.totalorder %s2079_s25, %s2079_s25 }
  0x27   :  { %p2086_p11 = por %p2085_p10, %p2084_p9 }
  0x29   :  { %p2087_p12 = pnand %p2086_p11, %p2080_p8 }
  0x2b   :  { %2090 = shalt.err (!%p2087_p12)
}
  0x2c   :  { %s2405_s26 = smov 32   ;;  %s2406_s27 = smov 2  }
  0x2d   :  { %63 = dma.hbm_to_vmem [thread:$0]  %s2928_s4, 96, %s58_s1, [#allocation14], %s2405_s26, %s2405_s26, %s2406_s27  }
  0x2e   :  { %s2407_s30 = smov [#allocation16]   ;;  %s2408_s19 = smov [#allocation19]  }
  0x2f   :  { %s81_s0 = sshll.u32 %s2407_s30, 4  ;;  %s105_s20 = sshll.u32 %s2408_s19, 4  ;;  %s82_s0 = int_to_ptr.vmem [resolvable:$true] %s81_s0  ;;  %s106_s20 = int_to_ptr.vmem [resolvable:$true] %s105_s20 }
  0x30   :  { %s2091_s2 = scalar_lea.hbm %s2930_s6, 512 }
  0x31   :  { %p2092_p13 = scmp.ne.s32.totalorder %s2930_s6, %s2091_s2  ;;  %p2095_p0 = scmp.lt.u32.totalorder %s2091_s2, %s2930_s6 }
  0x33   :  { %p2097_p1 = pnand %p2095_p0, %p2092_p13 }
  0x35   :  { %2100 = shalt.err (!%p2097_p1)
}
  0x36   :  { %s2101_s4 = scalar_lea.vmem %s82_s0, 512  ;;  %p2106_p3 = scmp.lt.s32.totalorder %s82_s0, %s82_s0 }
  0x37   :  { %p2102_p2 = scmp.ne.s32.totalorder %s82_s0, %s2101_s4  ;;  %p2107_p4 = scmp.lt.s32.totalorder %s2101_s4, %s2101_s4 }
  0x39   :  { %p2108_p5 = por %p2107_p4, %p2106_p3 }
  0x3b   :  { %p2109_p6 = pnand %p2108_p5, %p2102_p2 }
  0x3d   :  { %2112 = shalt.err (!%p2109_p6)
}
  0x3e   :  { %s2409_s1 = smov 128   ;;  %s2410_s28 = smov 8  }
  0x3f   :  { %87 = dma.hbm_to_vmem [thread:$0]  %s2930_s6, 512, %s82_s0, [#allocation17], %s2409_s1, %s2409_s1, %s2410_s28  }
  0x40   :  { %s2113_s22 = scalar_lea.hbm %s2932_s8, 512 }
  0x41   :  { %p2114_p7 = scmp.ne.s32.totalorder %s2932_s8, %s2113_s22  ;;  %p2117_p8 = scmp.lt.u32.totalorder %s2113_s22, %s2932_s8 }
  0x43   :  { %p2119_p9 = pnand %p2117_p8, %p2114_p7 }
  0x45   :  { %2122 = shalt.err (!%p2119_p9)
}
  0x46   :  { %s2123_s25 = scalar_lea.vmem %s106_s20, 512  ;;  %p2128_p11 = scmp.lt.s32.totalorder %s106_s20, %s106_s20 }
  0x47   :  { %p2124_p10 = scmp.ne.s32.totalorder %s106_s20, %s2123_s25  ;;  %p2129_p12 = scmp.lt.s32.totalorder %s2123_s25, %s2123_s25 }
  0x49   :  { %p2130_p13 = por %p2129_p12, %p2128_p11 }
  0x4b   :  { %p2131_p0 = pnand %p2130_p13, %p2124_p10 }
  0x4d   :  { %2134 = shalt.err (!%p2131_p0)
}
  0x4e   :  { %111 = dma.hbm_to_vmem [thread:$0]  %s2932_s8, 512, %s106_s20, [#allocation20], %s2409_s1, %s2409_s1, %s2410_s28  }
  0x4f   :  { %s2411_s4 = smov [#allocation22]   ;;  %s2412_s30 = smov [#allocation25]  }
  0x50   :  { %s128_s29 = sshll.u32 %s2411_s4, 4  ;;  %s147_s19 = sshll.u32 %s2412_s30, 4  ;;  %s129_s29 = int_to_ptr.vmem [resolvable:$true] %s128_s29  ;;  %s148_s19 = int_to_ptr.vmem [resolvable:$true] %s147_s19 }
  0x51   :  { %s2135_s2 = scalar_lea.hbm %s2935_s11, 16 }
  0x52   :  { %p2136_p1 = scmp.ne.s32.totalorder %s2935_s11, %s2135_s2  ;;  %p2139_p2 = scmp.lt.u32.totalorder %s2135_s2, %s2935_s11 }
  0x54   :  { %p2141_p3 = pnand %p2139_p2, %p2136_p1 }
  0x56   :  { %2144 = shalt.err (!%p2141_p3)
}
  0x57   :  { %s2145_s8 = scalar_lea.vmem %s129_s29, 16  ;;  %s2149_s20 = scalar_lea.vmem %s129_s29, 32 }
  0x58   :  { %p2146_p4 = scmp.ne.s32.totalorder %s129_s29, %s2145_s8  ;;  %p2150_p5 = scmp.lt.s32.totalorder %s129_s29, %s129_s29 }
  0x59   :  { %p2151_p6 = scmp.lt.s32.totalorder %s2149_s20, %s2145_s8 }
  0x5b   :  { %p2152_p7 = por %p2151_p6, %p2150_p5 }
  0x5d   :  { %p2153_p8 = pnand %p2152_p7, %p2146_p4 }
  0x5f   :  { %2156 = shalt.err (!%p2153_p8)
}
  0x60   :  { %131 = dma.hbm_to_vmem [thread:$0]  %s2935_s11, 16, %s129_s29, [#allocation23]  }
  0x61   :  { %s2157_s21 = scalar_lea.hbm %s2938_s14, 512 }
  0x62   :  { %p2158_p9 = scmp.ne.s32.totalorder %s2938_s14, %s2157_s21  ;;  %p2161_p10 = scmp.lt.u32.totalorder %s2157_s21, %s2938_s14 }
  0x64   :  { %p2163_p11 = pnand %p2161_p10, %p2158_p9 }
  0x66   :  { %2166 = shalt.err (!%p2163_p11)
}
  0x67   :  { %s2167_s24 = scalar_lea.vmem %s148_s19, 512  ;;  %p2172_p13 = scmp.lt.s32.totalorder %s148_s19, %s148_s19 }
  0x68   :  { %p2168_p12 = scmp.ne.s32.totalorder %s148_s19, %s2167_s24  ;;  %p2173_p0 = scmp.lt.s32.totalorder %s2167_s24, %s2167_s24 }
  0x6a   :  { %p2174_p1 = por %p2173_p0, %p2172_p13 }
  0x6c   :  { %p2175_p2 = pnand %p2174_p1, %p2168_p12 }
  0x6e   :  { %2178 = shalt.err (!%p2175_p2)
}
  0x6f   :  { %153 = dma.hbm_to_vmem [thread:$0]  %s2938_s14, 512, %s148_s19, [#allocation26], %s2409_s1, %s2409_s1, %s2410_s28  }
  0x70   :  { %s2413_s25 = smov [#allocation10]   ;;  %s2414_s20 = smov [#allocation15]  }
  0x71   :  { %s45_s8 = sshll.u32 %s2413_s25, 4  ;;  %s69_s6 = sshll.u32 %s2414_s20, 4  ;;  %s46_s8 = int_to_ptr.vmem [resolvable:$true] %s45_s8  ;;  %s70_s6 = int_to_ptr.vmem [resolvable:$true] %s69_s6 }
  0x72   :  { %s2179_s30 = scalar_lea.hbm %s2927_s3, 96 }
  0x73   :  { %p2180_p3 = scmp.ne.s32.totalorder %s2927_s3, %s2179_s30  ;;  %p2183_p4 = scmp.lt.u32.totalorder %s2179_s30, %s2927_s3 }
  0x75   :  { %p2185_p5 = pnand %p2183_p4, %p2180_p3 }
  0x77   :  { %2188 = shalt.err (!%p2185_p5)
}
  0x78   :  { %s2189_s14 = scalar_lea.vmem %s46_s8, 96  ;;  %p2194_p7 = scmp.lt.s32.totalorder %s46_s8, %s46_s8 }
  0x79   :  { %p2190_p6 = scmp.ne.s32.totalorder %s46_s8, %s2189_s14  ;;  %p2195_p8 = scmp.lt.s32.totalorder %s2189_s14, %s2189_s14 }
  0x7b   :  { %p2196_p9 = por %p2195_p8, %p2194_p7 }
  0x7d   :  { %p2197_p10 = pnand %p2196_p9, %p2190_p6 }
  0x7f   :  { %2200 = shalt.err (!%p2197_p10)
}
  0x80   :  { %51 = dma.hbm_to_vmem [thread:$0]  %s2927_s3, 96, %s46_s8, [#allocation11], %s2405_s26, %s2405_s26, %s2406_s27  }
  0x81   :  { %s2201_s29 = scalar_lea.hbm %s2929_s5, 512 }
  0x82   :  { %p2202_p11 = scmp.ne.s32.totalorder %s2929_s5, %s2201_s29  ;;  %p2205_p12 = scmp.lt.u32.totalorder %s2201_s29, %s2929_s5 }
  0x84   :  { %p2207_p13 = pnand %p2205_p12, %p2202_p11 }
  0x86   :  { %2210 = shalt.err (!%p2207_p13)
}
  0x87   :  { %s2211_s30 = scalar_lea.vmem %s70_s6, 512  ;;  %p2216_p1 = scmp.lt.s32.totalorder %s70_s6, %s70_s6 }
  0x88   :  { %p2212_p0 = scmp.ne.s32.totalorder %s70_s6, %s2211_s30  ;;  %p2217_p2 = scmp.lt.s32.totalorder %s2211_s30, %s2211_s30 }
  0x8a   :  { %p2218_p3 = por %p2217_p2, %p2216_p1 }
  0x8c   :  { %p2219_p4 = pnand %p2218_p3, %p2212_p0 }
  0x8e   :  { %2222 = shalt.err (!%p2219_p4)
}
  0x8f   :  { %75 = dma.hbm_to_vmem [thread:$0]  %s2929_s5, 512, %s70_s6, [#allocation14], %s2409_s1, %s2409_s1, %s2410_s28  }
  0x90   :  { %s2415_s21 = smov [#allocation18]   ;;  %s2416_s2 = smov [#allocation21]  }
  0x91   :  { %s93_s22 = sshll.u32 %s2415_s21, 4  ;;  %s118_s12 = sshll.u32 %s2416_s2, 4  ;;  %s94_s22 = int_to_ptr.vmem [resolvable:$true] %s93_s22  ;;  %s119_s12 = int_to_ptr.vmem [resolvable:$true] %s118_s12 }
  0x92   :  { %s2223_s23 = scalar_lea.hbm %s2931_s7, 512 }
  0x93   :  { %p2224_p5 = scmp.ne.s32.totalorder %s2931_s7, %s2223_s23  ;;  %p2227_p6 = scmp.lt.u32.totalorder %s2223_s23, %s2931_s7 }
  0x95   :  { %p2229_p7 = pnand %p2227_p6, %p2224_p5 }
  0x97   :  { %2232 = shalt.err (!%p2229_p7)
}
  0x98   :  { %s2233_s5 = scalar_lea.vmem %s94_s22, 512  ;;  %p2238_p9 = scmp.lt.s32.totalorder %s94_s22, %s94_s22 }
  0x99   :  { %p2234_p8 = scmp.ne.s32.totalorder %s94_s22, %s2233_s5  ;;  %p2239_p10 = scmp.lt.s32.totalorder %s2233_s5, %s2233_s5 }
  0x9b   :  { %p2240_p11 = por %p2239_p10, %p2238_p9 }
  0x9d   :  { %p2241_p12 = pnand %p2240_p11, %p2234_p8 }
  0x9f   :  { %2244 = shalt.err (!%p2241_p12)
}
  0xa0   :  { %99 = dma.hbm_to_vmem [thread:$0]  %s2931_s7, 512, %s94_s22, [#allocation17], %s2409_s1, %s2409_s1, %s2410_s28  }
  0xa1   :  { %s2245_s30 = scalar_lea.hbm %s2933_s9, 16 }
  0xa2   :  { %p2246_p13 = scmp.ne.s32.totalorder %s2933_s9, %s2245_s30  ;;  %p2249_p0 = scmp.lt.u32.totalorder %s2245_s30, %s2933_s9 }
  0xa4   :  { %p2251_p1 = pnand %p2249_p0, %p2246_p13 }
  0xa6   :  { %2254 = shalt.err (!%p2251_p1)
}
  0xa7   :  { %s2255_s14 = scalar_lea.vmem %s119_s12, 16  ;;  %s2259_s19 = scalar_lea.vmem %s119_s12, 32 }
  0xa8   :  { %p2256_p2 = scmp.ne.s32.totalorder %s119_s12, %s2255_s14  ;;  %p2260_p3 = scmp.lt.s32.totalorder %s119_s12, %s119_s12 }
  0xa9   :  { %p2261_p4 = scmp.lt.s32.totalorder %s2259_s19, %s2255_s14 }
  0xab   :  { %p2262_p5 = por %p2261_p4, %p2260_p3 }
  0xad   :  { %p2263_p6 = pnand %p2262_p5, %p2256_p2 }
  0xaf   :  { %2266 = shalt.err (!%p2263_p6)
}
  0xb0   :  { %121 = dma.hbm_to_vmem [thread:$0]  %s2933_s9, 16, %s119_s12, [#allocation20]  }
  0xb1   :  { %s2417_s28 = smov [#allocation24]   ;;  %s2418_s23 = smov [#allocation27]  }
  0xb2   :  { %s138_s22 = sshll.u32 %s2417_s28, 4  ;;  %s160_s24 = sshll.u32 %s2418_s23, 4  ;;  %s139_s22 = int_to_ptr.vmem [resolvable:$true] %s138_s22  ;;  %s161_s24 = int_to_ptr.vmem [resolvable:$true] %s160_s24 }
  0xb3   :  { %s2267_s25 = scalar_lea.hbm %s2937_s13, 16 }
  0xb4   :  { %p2268_p7 = scmp.ne.s32.totalorder %s2937_s13, %s2267_s25  ;;  %p2271_p8 = scmp.lt.u32.totalorder %s2267_s25, %s2937_s13 }
  0xb6   :  { %p2273_p9 = pnand %p2271_p8, %p2268_p7 }
  0xb8   :  { %2276 = shalt.err (!%p2273_p9)
}
  0xb9   :  { %s2277_s9 = scalar_lea.vmem %s139_s22, 16  ;;  %s2281_s12 = scalar_lea.vmem %s139_s22, 32 }
  0xba   :  { %p2278_p10 = scmp.ne.s32.totalorder %s139_s22, %s2277_s9  ;;  %p2282_p11 = scmp.lt.s32.totalorder %s139_s22, %s139_s22 }
  0xbb   :  { %p2283_p12 = scmp.lt.s32.totalorder %s2281_s12, %s2277_s9 }
  0xbd   :  { %p2284_p13 = por %p2283_p12, %p2282_p11 }
  0xbf   :  { %p2285_p0 = pnand %p2284_p13, %p2278_p10 }
  0xc1   :  { %2288 = shalt.err (!%p2285_p0)
}
  0xc2   :  { %141 = dma.hbm_to_vmem [thread:$0]  %s2937_s13, 16, %s139_s22, [#allocation23]  }
  0xc3   :  { %s2289_s21 = scalar_lea.hbm %s2939_s15, 16 }
  0xc4   :  { %p2290_p1 = scmp.ne.s32.totalorder %s2939_s15, %s2289_s21  ;;  %p2293_p2 = scmp.lt.u32.totalorder %s2289_s21, %s2939_s15 }
  0xc6   :  { %p2295_p3 = pnand %p2293_p2, %p2290_p1 }
  0xc8   :  { %2298 = shalt.err (!%p2295_p3)
}
  0xc9   :  { %s2299_s1 = scalar_lea.vmem %s161_s24, 16  ;;  %s2303_s28 = scalar_lea.vmem %s161_s24, 32 }
  0xca   :  { %p2300_p4 = scmp.ne.s32.totalorder %s161_s24, %s2299_s1  ;;  %p2304_p5 = scmp.lt.s32.totalorder %s161_s24, %s161_s24 }
  0xcb   :  { %p2305_p6 = scmp.lt.s32.totalorder %s2303_s28, %s2299_s1 }
  0xcd   :  { %p2306_p7 = por %p2305_p6, %p2304_p5 }
  0xcf   :  { %p2307_p8 = pnand %p2306_p7, %p2300_p4 }
  0xd1   :  { %2310 = shalt.err (!%p2307_p8)
}
  0xd2   :  { %163 = dma.hbm_to_vmem [thread:$0]  %s2939_s15, 16, %s161_s24, [#allocation26]  }
  0xd3   :  { %2379 = dma.done.wait [#allocation11], 96  }
  0xd4   :  { %2380 = vsyncadd [#allocation11], 4294967200 }
  0xd5   :  { %2381 = dma.done.wait [#allocation14], 608  }
  0xd6   :  { %2382 = vsyncadd [#allocation14], 4294966688 }
  0xd7   :  { %2383 = dma.done.wait [#allocation17], 1024  }
  0xd8   :  { %2384 = vsyncadd [#allocation17], 4294966272 }
  0xd9   :  { %2385 = dma.done.wait [#allocation20], 528  }
  0xda   :  { %2386 = vsyncadd [#allocation20], 4294966768 }
  0xdb   :  { %2387 = dma.done.wait [#allocation23], 32  }
  0xdc   :  { %2388 = vsyncadd [#allocation23], 4294967264 }
  0xdd   :  { %2389 = dma.done.wait [#allocation26], 528  }
  0xde   :  { %2390 = vsyncadd [#allocation26], 4294966768  ;;  %s1747_s23 = sld [smem:[#allocation9 + $0x1]]  ;;  %s201_s11 = sld [smem:[#allocation9]] }
  0xdf   :  { %s2951_s5 = sld [smem:[#allocation50_spill]] }
  0xe5   :  { %s203_s6 = scalar_lea.vmem %s2951_s5, %s201_s11 }
  0xe6   :  { %v221_v0 = vld [vmem:[%s203_s6] sm:$0x1] }
  0xe7   :  { %222 = vst [vmem:[#allocation2] sm:$0x1] %v221_v0 }
  0xe8   :  { %247 = vsyncadd [#allocation6], 16  ;;  %s248_s20 = scalar_lea.vmem %s2951_s5, %s1747_s23 }
  0xe9   :  { %v268_v1 = vld [vmem:[%s248_s20] sm:$0x1] }
  0xea   :  { %269 = vst [vmem:[#allocation2 + $0x1] sm:$0x1] %v268_v1 }
  0xeb   :  { %294 = vsyncadd [#allocation6 + $0x1], 16  ;;  %v2688_v2 = vld [vmem:[%s2934_s10] sm:$0xff]  ;;  %v2693_v3 = vld [vmem:[%s2934_s10 + $0x8] sm:$0xff] }
  0xec   :  { %v2698_v4 = vld [vmem:[%s2934_s10 + $0x10] sm:$0xff]  ;;  %v2703_v5 = vld [vmem:[%s2934_s10 + $0x18] sm:$0xff]  ;;  %v2708_v6 = vld [vmem:[%s2934_s10 + $0x20] sm:$0xff] }
  0xed   :  { %v2713_v7 = vld [vmem:[%s2934_s10 + $0x28] sm:$0xff]  ;;  %v2718_v8 = vld [vmem:[%s2934_s10 + $0x30] sm:$0xff]  ;;  %v2723_v9 = vld [vmem:[%s2934_s10 + $0x38] sm:$0xff] }
  0xee   :  { %350 = vsyncadd [#allocation7], 1024  ;;  %s2952_s29 = sld [smem:[#allocation52_spill]] }
  0xf4   :  { %v2728_v10 = vld [vmem:[%s2952_s29] sm:$0xff]  ;;  %v2733_v11 = vld [vmem:[%s2952_s29 + $0x8] sm:$0xff]  ;;  %v2738_v12 = vld [vmem:[%s2952_s29 + $0x10] sm:$0xff] }
  0xf5   :  { %v2743_v13 = vld [vmem:[%s2952_s29 + $0x18] sm:$0xff]  ;;  %v2748_v14 = vld [vmem:[%s2952_s29 + $0x20] sm:$0xff]  ;;  %v2753_v15 = vld [vmem:[%s2952_s29 + $0x28] sm:$0xff] }
  0xf6   :  { %v2758_v16 = vld [vmem:[%s2952_s29 + $0x30] sm:$0xff]  ;;  %v2763_v17 = vld [vmem:[%s2952_s29 + $0x38] sm:$0xff] }
  0xf7   :  { %407 = vsyncadd [#allocation7 + $0x1], 1024  ;;  %v409_v18 = vld [vmem:[#allocation15] sm:$0xff]  ;;  %v410_v19 = vld [vmem:[#allocation15 + $0x8] sm:$0xff]  ;;  %v2419_v20 = vmov 0.0|0.0   ;;  %vm2420_vm0 = vmmov 0   ;;  %v491_v30 = vlaneseq }
  0xf8   :  { %1946 = vmatprep.subr.bf16.mxu0 %v2419_v20  ;;  %v1947_v21 = vpack.c.bf16 %v410_v19, %v409_v18  ;;  %v411_v22 = vld [vmem:[#allocation15 + $0x10] sm:$0xff]  ;;  %v412_v23 = vld [vmem:[#allocation15 + $0x18] sm:$0xff]  ;;  %v2421_v24 = vmov 0.0   ;;  %vm413_vm1 = vcmask 261120   ;;  %s2953_s14 = sld [smem:[#allocation51_spill]]  ;;  %vm662_vm2 = vcmask 57344  }
  0xf9   :  { %1835 = vmatprep.mubr.msk.f32.mxu0 %vm2420_vm0, %v2421_v24  ;;  %1838 = vmatprep.subr.mxu1 %v2421_v24  ;;  %v1950_v25 = vpack.c.bf16 %v412_v23, %v411_v22  ;;  %v408_v26 = vld [vmem:[#allocation10] sm:$0x3]  ;;  %v2422_v28 = vmov 1966171168   ;;  %v492_v32 = vshrl.u32 %v491_v30, 7  ;;  %vm687_vm3 = vcmask 64512  }
  0xfa   :  { %1948 = vmatpush3.bf16.msra.mxu0 %v1947_v21  ;;  %1840 = vmatprep.mubr.msk.f32.mxu1 %vm2420_vm0, %v2421_v24  ;;  %v489_v29 = vunpack.c.l.s4 %v2422_v28 }
  0xfb   :  { %1949 = vmatprep.subr.bf16.mxu0 %v2419_v20 }
  0xfc   :  { %v490_v31 = vunpack.c.0.s8 %v489_v29 }
  0xfe   :  { %1951 = vmatpush3.bf16.msra.mxu0 %v1950_v25  ;;  %v510_v27 = vld [vmem:[%s2953_s14] sm:$0xff]  ;;  %v493_v33 = vsub.s32 %v490_v31, %v492_v32  ;;  %v511_v39 = vld [vmem:[%s2953_s14 + $0x8] sm:$0xff] }
  0xff   :  { %1848 = vmatprep.subr.mxu0 %v2421_v24  ;;  %1839 = vmatpush3.xpose.msk.msra.mxu1 %vm413_vm1, %v510_v27 }
 0x100   :  { %1843 = vmatprep.subr.mxu1 %v2421_v24 }
 0x101   :  { %1836 = vmatmul.mubr.msk.f32.vlgmr.msra.gmra.mrb[0].mxu0 %vm413_vm1, %v408_v26 }
 0x102   :  { %1850 = vmatprep.mubr.msk.f32.mxu0 %vm2420_vm0, %v2421_v24  ;;  %1849 = vmatpush3.msra.mxu0 %v510_v27 }
 0x1d4   :  { %v483_v34 = vpop.f32.mrb[0].mxu0 }
 0x1d5   :  { %v494_v35 = vrot.slane %v483_v34, %v493_v33  ;;  %v1837_v36 = vpop.f32.mrb[1].mxu0 }
 0x1d7   :  { %v495_v37 = vcombine.high %v494_v35, %v494_v35  ;;  %v502_v38 = vrot.slane %v494_v35, %v493_v33 }
 0x1d9   :  { %1841 = vmatmul.mubr.msk.f32.vlgmr.msra.gmra.mrb[0].mxu1 %vm413_vm1, %v502_v38  ;;  %v509_v40 = vrot.slane %v495_v37, %v493_v33 }
 0x1da   :  { %1844 = vmatpush3.xpose.msk.msra.mxu1 %vm413_vm1, %v511_v39  ;;  %1845 = vmatprep.mubr.msk.f32.mxu1 %vm2420_vm0, %v2421_v24 }
 0x1db   :  { %1853 = vmatprep.subr.mxu1 %v2421_v24 }
 0x1dd   :  { %1846 = vmatmul.mubr.msk.f32.vlgmr.msra.gmra.mrb[2].mxu1 %vm413_vm1, %v509_v40 }
 0x1de   :  { %1854 = vmatpush3.msra.mxu1 %v511_v39  ;;  %1855 = vmatprep.mubr.msk.f32.mxu1 %vm2420_vm0, %v2421_v24 }
 0x2ac   :  { %v583_v41 = vpop.f32.mrb[0].mxu1 }
 0x2ad   :  { %v1842_v42 = vpop.f32.mrb[1].mxu1  ;;  %v663_v43 = vsel %vm662_vm2, %v583_v41, -inf }
 0x2ae   :  { %664 = vmax.xlane.f32.xlu0 %v663_v43 }
 0x2b0   :  { %v658_v44 = vpop.f32.mrb[2].mxu1 }
 0x2b1   :  { %v1847_v45 = vpop.f32.mrb[3].mxu1  ;;  %v666_v46 = vsel %vm662_vm2, %v658_v44, -inf }
 0x2b2   :  { %667 = vmax.xlane.f32.xlu0 %v666_v46 }
 0x33b   :  { %v665_v47 = vpop.xlane.xlu0 %664 }
 0x33c   :  { %v669_v48 = vsub.f32 %v583_v41, %v665_v47 }
 0x33e   :  { %v671_v49 = vmul.f32 1.442695, %v669_v48 }
 0x33f   :  { %v668_v50 = vpop.xlane.xlu0 %667 }
 0x340   :  { %2025 = vpow2.f32 %v671_v49  ;;  %v670_v51 = vsub.f32 %v658_v44, %v668_v50 }
 0x342   :  { %v673_v52 = vmul.f32 1.442695, %v670_v51 }
 0x344   :  { %2027 = vpow2.f32 %v673_v52 }
 0x34a   :  { %v2026_v53 = vpop.eup %2025 }
 0x34b   :  { %v675_v54 = vsel %vm662_vm2, %v2026_v53, 0.0 }
 0x34c   :  { %676 = vadd.xlane.f32.xlu1 %v675_v54 }
 0x34e   :  { %v2028_v55 = vpop.eup %2027 }
 0x34f   :  { %v678_v56 = vsel %vm662_vm2, %v2028_v55, 0.0 }
 0x350   :  { %679 = vadd.xlane.f32.xlu1 %v678_v56 }
 0x3d9   :  { %v677_v57 = vpop.xlane.xlu1 %676 }
 0x3da   :  { %2029 = vrcp.f32 %v677_v57 }
 0x3dd   :  { %v680_v58 = vpop.xlane.xlu1 %679 }
 0x3de   :  { %2031 = vrcp.f32 %v680_v58 }
 0x3e4   :  { %v2030_v59 = vpop.eup %2029 }
 0x3e5   :  { %v683_v60 = vmul.f32 %v2030_v59, %v2026_v53 }
 0x3e7   :  { %1851 = vmatmul.mubr.msk.f32.vlgmr.msra.gmra.mrb[2].mxu0 %vm687_vm3, %v683_v60 }
 0x3e8   :  { %v2032_v61 = vpop.eup %2031 }
 0x3e9   :  { %v684_v62 = vmul.f32 %v2032_v61, %v2028_v55 }
 0x3eb   :  { %1856 = vmatmul.mubr.msk.f32.vlgmr.msra.gmra.mrb[4].mxu1 %vm687_vm3, %v684_v62 }
 0x4ba   :  { %v757_v63 = vpop.f32.mrb[2].mxu0 }
 0x4bb   :  { %v1852_v0 = vpop.f32.mrb[3].mxu0 }
 0x4be   :  { %v830_v1 = vpop.f32.mrb[4].mxu1 }
 0x4bf   :  { %v1857_v18 = vpop.f32.mrb[5].mxu1 }
 0x4c0   :  { %2391 = dma.done.wait [#allocation6], 16 }
 0x4c1   :  { %2392 = vsyncadd [#allocation6], 4294967280 }
 0x4c2   :  { %2393 = dma.done.wait [#allocation6 + $0x1], 16 }
 0x4c3   :  { %2394 = vsyncadd [#allocation6 + $0x1], 4294967280  ;;  %1952 = vmatprep.subr.bf16.mxu0 %v2419_v20  ;;  %1958 = vmatprep.subr.bf16.mxu1 %v2419_v20  ;;  %v844_v19 = vld [vmem:[#allocation18] sm:$0xff]  ;;  %v845_v21 = vld [vmem:[#allocation18 + $0x8] sm:$0xff]  ;;  %v850_v32 = vrot.slane %v830_v1, 7  ;;  %vm851_vm4 = vcmask 1041409  }
 0x4c4   :  { %1866 = vmatprep.mubr.msk.f32.mxu0 %vm2420_vm0, %v2421_v24  ;;  %1877 = vmatprep.mubr.msk.f32.mxu1 %vm2420_vm0, %v2421_v24  ;;  %v840_v22 = vld [vmem:[#allocation16] sm:$0xff]  ;;  %v1953_v23 = vpack.c.bf16 %v845_v21, %v844_v19  ;;  %v841_v25 = vld [vmem:[#allocation16 + $0x8] sm:$0xff]  ;;  %v846_v26 = vld [vmem:[#allocation18 + $0x10] sm:$0xff]  ;;  %s2423_s1 = smov 64  }
 0x4c5   :  { %v847_v27 = vld [vmem:[#allocation18 + $0x18] sm:$0xff]  ;;  %v1959_v28 = vpack.c.bf16 %v841_v25, %v840_v22  ;;  %v842_v29 = vld [vmem:[#allocation16 + $0x10] sm:$0xff]  ;;  %v999_v34 = vld [vmem:[#allocation19] sm:$0xff]  ;;  %v852_v36 = vsel %vm851_vm4, %v850_v32, %v757_v63 }
 0x4c6   :  { %v843_v30 = vld [vmem:[#allocation16 + $0x18] sm:$0xff]  ;;  %1954 = vmatpush3.bf16.msra.mxu0 %v1953_v23  ;;  %v1956_v31 = vpack.c.bf16 %v847_v27, %v846_v26  ;;  %v1000_v35 = vld [vmem:[#allocation19 + $0x8] sm:$0xff]  ;;  %v839_v38 = vld [vmem:[#allocation2] sm:$0x3] }
 0x4c7   :  { %1960 = vmatpush3.bf16.msra.mxu1 %v1959_v28  ;;  %1955 = vmatprep.subr.bf16.mxu0 %v2419_v20  ;;  %v1962_v33 = vpack.c.bf16 %v843_v30, %v842_v29  ;;  %v1965_v37 = vpack.c.bf16 %v1000_v35, %v999_v34  ;;  %v1001_v39 = vld [vmem:[#allocation19 + $0x10] sm:$0xff]  ;;  %v1002_v40 = vld [vmem:[#allocation19 + $0x18] sm:$0xff]  ;;  %v1758_v49 = vld [vmem:[#allocation21] ss:$0 sm:$0xff] }
 0x4c8   :  { %1961 = vmatprep.subr.bf16.mxu1 %v2419_v20  ;;  %v1968_v41 = vpack.c.bf16 %v1002_v40, %v1001_v39  ;;  %v998_v42 = vld [vmem:[#allocation10] sm:$0x3]  ;;  %v1085_v54 = vld [vmem:[#allocation13] sm:$0x3] }
 0x4ca   :  { %1957 = vmatpush3.bf16.msra.mxu0 %v1956_v31 }
 0x4cb   :  { %1963 = vmatpush3.bf16.msra.mxu1 %v1962_v33  ;;  %1964 = vmatprep.subr.bf16.mxu0 %v2419_v20 }
 0x4cd   :  { %1867 = vmatmul.mubr.msk.f32.vlgmr.msra.gmra.mrb[4].mxu0 %vm413_vm1, %v852_v36 }
 0x4ce   :  { %1878 = vmatmul.mubr.msk.f32.vlgmr.msra.gmra.mrb[6].mxu1 %vm413_vm1, %v839_v38  ;;  %1966 = vmatpush3.bf16.msra.mxu0 %v1965_v37 }
 0x4cf   :  { %1967 = vmatprep.subr.bf16.mxu0 %v2419_v20  ;;  %1888 = vmatprep.mubr.msk.f32.mxu0 %vm2420_vm0, %v2421_v24 }
 0x4d2   :  { %1969 = vmatpush3.bf16.msra.mxu0 %v1968_v41 }
 0x4d5   :  { %1889 = vmatmul.mubr.msk.f32.vlgmr.msra.gmra.mrb[6].mxu0 %vm413_vm1, %v998_v42 }
 0x5a0   :  { %v921_v43 = vpop.f32.mrb[4].mxu0 }
 0x5a1   :  { %v1868_v44 = vpop.f32.mrb[5].mxu0  ;;  %v994_v45 = vpop.f32.mrb[6].mxu1 }
 0x5a2   :  { %v995_v46 = vadd.f32 %v994_v45, %v921_v43  ;;  %v1879_v47 = vpop.f32.mrb[7].mxu1 }
 0x5a8   :  { %v1072_v48 = vpop.f32.mrb[6].mxu0 }
 0x5a9   :  { %v1076_v50 = vadd.f32 %v1072_v48, %v995_v46  ;;  %v1890_v51 = vpop.f32.mrb[7].mxu0 }
 0x5ab   :  { %v1084_v52 = vadd.f32 %v1758_v49, %v1076_v50 }
 0x5ad   :  { %2033 = vtanh.f32 %v1084_v52  ;;  %v1759_v55 = vmul.f32 -1.442695, %v1084_v52 }
 0x5af   :  { %2035 = vpow2.f32 %v1759_v55 }
 0x5b7   :  { %v2034_v53 = vpop.eup %2033 }
 0x5b8   :  { %1099 = vrot.lane.b32.xlu0 %v2034_v53, %s2423_s1 }
 0x5b9   :  { %v2036_v56 = vpop.eup %2035 }
 0x5ba   :  { %v1089_v57 = vadd.f32 1.0, %v2036_v56 }
 0x5bc   :  { %1094 = vrot.lane.b32.xlu0 %v1085_v54, %s2405_s26  ;;  %2037 = vrcp.f32 %v1089_v57 }
 0x5c6   :  { %v2038_v58 = vpop.eup %2037 }
 0x62a   :  { %v1100_v59 = vpop.permute.xlu0 %1099 }
 0x62b   :  { %v1102_v60 = vmul.f32 %v2038_v58, %v1100_v59 }
 0x62d   :  { %1104 = vrot.lane.b32.xlu1 %v1102_v60, %s2405_s26 }
 0x62e   :  { %v1095_v61 = vpop.permute.xlu0 %1094 }
 0x62f   :  { %v1097_v62 = vmul.f32 %v2038_v58, %v1095_v61 }
 0x69f   :  { %v1105_v63 = vpop.permute.xlu1 %1104 }
 0x6a0   :  { %v2814_v0 = vadd.f32 %v1105_v63, %v1097_v62 }
 0x6a2   :  { %2039 = vtanh.f32 %v2814_v0 }
 0x6ac   :  { %v2040_v1 = vpop.eup %2039 }
 0x6ad   :  { %1110 = vrot.lane.b32.xlu1 %v2040_v1, %s2423_s1 }
 0x71f   :  { %v1111_v18 = vpop.permute.xlu1 %1110 }
 0x720   :  { %v1113_v19 = vmul.f32 %v2038_v58, %v1111_v18 }
 0x722   :  { %1203 = vrot.lane.b32.xlu0 %v1113_v19, %s2405_s26 }
 0x723   :  { %2395 = dma.done.wait [#allocation7], 1024 }
 0x724   :  { %2396 = vsyncadd [#allocation7], 4294966272  ;;  %1970 = vmatprep.subr.bf16.mxu1 %v2419_v20  ;;  %v1971_v21 = vpack.c.bf16 %v2713_v7, %v2708_v6  ;;  %v1977_v22 = vpack.c.bf16 %v2693_v3, %v2688_v2  ;;  %1976 = vmatprep.subr.bf16.mxu0 %v2419_v20  ;;  %v1974_v23 = vpack.c.bf16 %v2723_v9, %v2718_v8  ;;  %v1123_v2 = vld [vmem:[#allocation10 + $0x2] sm:$0x3]  ;;  %v1286_v3 = vld [vmem:[#allocation13 + $0x2] sm:$0x3] }
 0x725   :  { %1899 = vmatprep.mubr.msk.f32.mxu1 %vm2420_vm0, %v2421_v24  ;;  %v1980_v25 = vpack.c.bf16 %v2703_v5, %v2698_v4  ;;  %1910 = vmatprep.mubr.msk.f32.mxu0 %vm2420_vm0, %v2421_v24  ;;  %v1762_v8 = vld [vmem:[#allocation22] ss:$0 sm:$0xff] }
 0x726   :  { %1972 = vmatpush3.bf16.msra.mxu1 %v1971_v21  ;;  %1978 = vmatpush3.bf16.msra.mxu0 %v1977_v22 }
 0x727   :  { %1973 = vmatprep.subr.bf16.mxu1 %v2419_v20  ;;  %1979 = vmatprep.subr.bf16.mxu0 %v2419_v20 }
 0x728   :  { %1295 = vrot.lane.b32.xlu1 %v1286_v3, %s2405_s26 }
 0x72a   :  { %1975 = vmatpush3.bf16.msra.mxu1 %v1974_v23  ;;  %1981 = vmatpush3.bf16.msra.mxu0 %v1980_v25 }
 0x72d   :  { %1900 = vmatmul.mubr.msk.f32.vlgmr.msra.gmra.mrb[8].mxu1 %vm413_vm1, %v1123_v2 }
 0x794   :  { %v1204_v6 = vpop.permute.xlu0 %1203 }
 0x795   :  { %1911 = vmatmul.mubr.msk.f32.vlgmr.msra.gmra.mrb[8].mxu0 %vm413_vm1, %v1204_v6 }
 0x79a   :  { %v1296_v35 = vpop.permute.xlu1 %1295 }
 0x800   :  { %v1198_v7 = vpop.f32.mrb[8].mxu1 }
 0x801   :  { %v1901_v4 = vpop.f32.mrb[9].mxu1 }
 0x868   :  { %v1273_v5 = vpop.f32.mrb[8].mxu0 }
 0x869   :  { %v1274_v9 = vadd.f32 %v1273_v5, %v1198_v7  ;;  %v1912_v26 = vpop.f32.mrb[9].mxu0 }
 0x86b   :  { %v1284_v27 = vadd.f32 %v1762_v8, %v1274_v9 }
 0x86d   :  { %2041 = vtanh.f32 %v1284_v27  ;;  %v1763_v29 = vmul.f32 -1.442695, %v1284_v27 }
 0x86f   :  { %2043 = vpow2.f32 %v1763_v29 }
 0x877   :  { %v2042_v28 = vpop.eup %2041 }
 0x878   :  { %1300 = vrot.lane.b32.xlu0 %v2042_v28, %s2423_s1 }
 0x879   :  { %v2044_v30 = vpop.eup %2043 }
 0x87a   :  { %v1290_v31 = vadd.f32 1.0, %v2044_v30 }
 0x87c   :  { %2045 = vrcp.f32 %v1290_v31 }
 0x886   :  { %v2046_v32 = vpop.eup %2045 }
 0x887   :  { %v1298_v36 = vmul.f32 %v2046_v32, %v1296_v35 }
 0x8ea   :  { %v1301_v33 = vpop.permute.xlu0 %1300 }
 0x8eb   :  { %v1303_v34 = vmul.f32 %v2046_v32, %v1301_v33 }
 0x8ed   :  { %1305 = vrot.lane.b32.xlu1 %v1303_v34, %s2405_s26 }
 0x95f   :  { %v1306_v37 = vpop.permute.xlu1 %1305 }
 0x960   :  { %v2840_v38 = vadd.f32 %v1306_v37, %v1298_v36 }
 0x962   :  { %2047 = vtanh.f32 %v2840_v38 }
 0x96c   :  { %v2048_v39 = vpop.eup %2047 }
 0x96d   :  { %1311 = vrot.lane.b32.xlu0 %v2048_v39, %s2423_s1 }
 0x9df   :  { %v1312_v40 = vpop.permute.xlu0 %1311 }
 0x9e0   :  { %v1314_v41 = vmul.f32 %v2046_v32, %v1312_v40 }
 0x9e2   :  { %1402 = vrot.lane.b32.xlu0 %v1314_v41, %s2405_s26 }
 0x9e3   :  { %2397 = dma.done.wait [#allocation7 + $0x1], 1024 }
 0x9e4   :  { %2398 = vsyncadd [#allocation7 + $0x1], 4294966272  ;;  %1982 = vmatprep.subr.bf16.mxu1 %v2419_v20  ;;  %v1983_v42 = vpack.c.bf16 %v2753_v15, %v2748_v14  ;;  %v1989_v43 = vpack.c.bf16 %v2733_v11, %v2728_v10  ;;  %vm1515_vm5 = vcmask 254976   ;;  %1988 = vmatprep.subr.bf16.mxu0 %v2419_v20  ;;  %v1986_v44 = vpack.c.bf16 %v2763_v17, %v2758_v16  ;;  %v1322_v10 = vld [vmem:[#allocation10 + $0x4] sm:$0x3]  ;;  %s2424_s28 = smov 96  }
 0x9e5   :  { %1921 = vmatprep.mubr.msk.f32.mxu1 %vm2420_vm0, %v2421_v24  ;;  %1516 = vst.msk [vmem:[#allocation29] sm:$0x3] %vm1515_vm5, %v1204_v6  ;;  %v1992_v45 = vpack.c.bf16 %v2743_v13, %v2738_v12  ;;  %1932 = vmatprep.mubr.msk.f32.mxu0 %vm2420_vm0, %v2421_v24  ;;  %v1485_v11 = vld [vmem:[#allocation13 + $0x4] sm:$0x3]  ;;  %v1766_v16 = vld [vmem:[#allocation24] ss:$0 sm:$0xff] }
 0x9e6   :  { %1984 = vmatpush3.bf16.msra.mxu1 %v1983_v42  ;;  %1990 = vmatpush3.bf16.msra.mxu0 %v1989_v43  ;;  %v1545_v59 = vld [vmem:[#allocation25] sm:$0xff]  ;;  %v1546_v60 = vld [vmem:[#allocation25 + $0x8] sm:$0xff]  ;;  %v1547_v62 = vld [vmem:[#allocation25 + $0x10] sm:$0xff]  ;;  %s2425_s13 = smov [#allocation29]  }
 0x9e7   :  { %1985 = vmatprep.subr.bf16.mxu1 %v2419_v20  ;;  %1991 = vmatprep.subr.bf16.mxu0 %v2419_v20  ;;  %v1995_v61 = vpack.c.bf16 %v1546_v60, %v1545_v59  ;;  %v1548_v63 = vld [vmem:[#allocation25 + $0x18] sm:$0xff]  ;;  %s1646_s22 = sshll.u32 %s2425_s13, 4  ;;  %s1647_s22 = int_to_ptr.vmem [resolvable:$true] %s1646_s22 }
 0x9e8   :  { %1494 = vrot.lane.b32.xlu1 %v1485_v11, %s2405_s26  ;;  %v1998_v1 = vpack.c.bf16 %v1548_v63, %v1547_v62  ;;  %s2311_s23 = scalar_lea.vmem %s1647_s22, 96  ;;  %p2316_p10 = scmp.lt.s32.totalorder %s1647_s22, %s1647_s22 }
 0x9e9   :  { %p2312_p9 = scmp.ne.s32.totalorder %s1647_s22, %s2311_s23  ;;  %p2317_p11 = scmp.lt.s32.totalorder %s2311_s23, %s2311_s23 }
 0x9ea   :  { %1987 = vmatpush3.bf16.msra.mxu1 %v1986_v44  ;;  %1993 = vmatpush3.bf16.msra.mxu0 %v1992_v45 }
 0x9eb   :  { %1994 = vmatprep.subr.bf16.mxu1 %v2419_v20  ;;  %p2318_p12 = por %p2317_p11, %p2316_p10 }
 0x9ed   :  { %1922 = vmatmul.mubr.msk.f32.vlgmr.msra.gmra.mrb[10].mxu1 %vm413_vm1, %v1322_v10  ;;  %p2319_p13 = pnand %p2318_p12, %p2312_p9 }
 0x9ee   :  { %1943 = vmatprep.mubr.msk.f32.mxu1 %vm2420_vm0, %v2421_v24  ;;  %1996 = vmatpush3.bf16.msra.mxu1 %v1995_v61 }
 0x9ef   :  { %1997 = vmatprep.subr.bf16.mxu1 %v2419_v20 }
 0x9f2   :  { %1999 = vmatpush3.bf16.msra.mxu1 %v1998_v1 }
 0xa54   :  { %v1403_v12 = vpop.permute.xlu0 %1402 }
 0xa55   :  { %1519 = vst.msk [vmem:[#allocation29 + $0x2] sm:$0x3] %vm1515_vm5, %v1403_v12  ;;  %1933 = vmatmul.mubr.msk.f32.vlgmr.msra.gmra.mrb[10].mxu0 %vm413_vm1, %v1403_v12 }
 0xa5a   :  { %v1495_v54 = vpop.permute.xlu1 %1494 }
 0xac0   :  { %v1397_v13 = vpop.f32.mrb[10].mxu1 }
 0xac1   :  { %v1923_v14 = vpop.f32.mrb[11].mxu1 }
 0xb28   :  { %v1472_v15 = vpop.f32.mrb[10].mxu0 }
 0xb29   :  { %v1473_v17 = vadd.f32 %v1472_v15, %v1397_v13  ;;  %v1934_v46 = vpop.f32.mrb[11].mxu0 }
 0xb2b   :  { %v1483_v47 = vadd.f32 %v1766_v16, %v1473_v17 }
 0xb2d   :  { %2049 = vtanh.f32 %v1483_v47  ;;  %v1767_v49 = vmul.f32 -1.442695, %v1483_v47 }
 0xb2f   :  { %2051 = vpow2.f32 %v1767_v49 }
 0xb37   :  { %v2050_v48 = vpop.eup %2049 }
 0xb38   :  { %1499 = vrot.lane.b32.xlu0 %v2050_v48, %s2423_s1 }
 0xb39   :  { %v2052_v50 = vpop.eup %2051 }
 0xb3a   :  { %v1489_v24 = vadd.f32 1.0, %v2052_v50 }
 0xb3c   :  { %2053 = vrcp.f32 %v1489_v24 }
 0xb46   :  { %v2054_v51 = vpop.eup %2053 }
 0xb47   :  { %v1497_v55 = vmul.f32 %v2054_v51, %v1495_v54 }
 0xbaa   :  { %v1500_v52 = vpop.permute.xlu0 %1499 }
 0xbab   :  { %v1502_v53 = vmul.f32 %v2054_v51, %v1500_v52 }
 0xbad   :  { %1504 = vrot.lane.b32.xlu1 %v1502_v53, %s2405_s26 }
 0xc1f   :  { %v1505_v56 = vpop.permute.xlu1 %1504 }
 0xc20   :  { %v1507_v57 = vadd.f32 %v1505_v56, %v1497_v55 }
 0xc22   :  { %2055 = vtanh.f32 %v1507_v57 }
 0xc2c   :  { %v2056_v58 = vpop.eup %2055 }
 0xc2d   :  { %1510 = vrot.lane.b32.xlu0 %v2056_v58, %s2423_s1 }
 0xc31   :  { %1527 = vrot.lane.b32.xlu0 %v2814_v0, %s2424_s28 }
 0xc35   :  { %1538 = vrot.lane.b32.xlu0 %v1507_v57, %s2424_s28 }
 0xc9f   :  { %v1511_v18 = vpop.permute.xlu0 %1510 }
 0xca0   :  { %v1513_v19 = vmul.f32 %v2054_v51, %v1511_v18 }
 0xca2   :  { %1521 = vrot.lane.b32.xlu1 %v1513_v19, %s2405_s26 }
 0xca3   :  { %v1528_v21 = vpop.permute.xlu0 %1527 }
 0xca4   :  { %1530 = vst.msk [vmem:[#allocation31] sm:$0x3] %vm1515_vm5, %v1528_v21 }
 0xca6   :  { %1532 = vrot.lane.b32.xlu1 %v2840_v38, %s2424_s28 }
 0xca7   :  { %v1539_v0 = vpop.permute.xlu0 %1538 }
 0xca8   :  { %1542 = vst.msk [vmem:[#allocation31 + $0x4] sm:$0x3] %vm1515_vm5, %v1539_v0 }
 0xd14   :  { %v1522_v22 = vpop.permute.xlu1 %1521 }
 0xd15   :  { %1525 = vst.msk [vmem:[#allocation29 + $0x4] sm:$0x3] %vm1515_vm5, %v1522_v22  ;;  %1543 = vst.msk [vmem:[#allocation3] sm:$0x3] %vm1515_vm5, %v1522_v22 }
 0xd18   :  { %v1533_v20 = vpop.permute.xlu1 %1532 }
 0xd19   :  { %1536 = vst.msk [vmem:[#allocation31 + $0x2] sm:$0x3] %vm1515_vm5, %v1533_v20 }
 0xd1c   :  { %v1544_v23 = vld [vmem:[#allocation3] sm:$0x3] }
 0xd1d   :  { %1944 = vmatmul.mubr.msk.f32.vlgmr.msra.gmra.mrb[12].mxu1 %vm413_vm1, %v1544_v23 }
 0xd1e   :  { %2322 = shalt.err (!%p2319_p13)
}
 0xd1f   :  { %s2323_s25 = scalar_lea.hbm %s2941_s17, 96 }
 0xd20   :  { %p2324_p0 = scmp.ne.s32.totalorder %s2941_s17, %s2323_s25  ;;  %p2327_p1 = scmp.lt.u32.totalorder %s2323_s25, %s2941_s17 }
 0xd22   :  { %p2329_p2 = pnand %p2327_p1, %p2324_p0 }
 0xd24   :  { %2332 = shalt.err (!%p2329_p2)
}
 0xd25   :  { %1652 = dma.vmem_to_hbm [thread:$0]  %s1647_s22, 96, %s2941_s17, [#allocation30], %s2405_s26, %s2405_s26, %s2406_s27  }
 0xd26   :  { %s2426_s0 = smov [#allocation31]  }
 0xd27   :  { %s1658_s9 = sshll.u32 %s2426_s0, 4  ;;  %s1659_s9 = int_to_ptr.vmem [resolvable:$true] %s1658_s9 }
 0xd28   :  { %s2333_s12 = scalar_lea.vmem %s1659_s9, 96  ;;  %p2338_p4 = scmp.lt.s32.totalorder %s1659_s9, %s1659_s9 }
 0xd29   :  { %p2334_p3 = scmp.ne.s32.totalorder %s1659_s9, %s2333_s12  ;;  %p2339_p5 = scmp.lt.s32.totalorder %s2333_s12, %s2333_s12 }
 0xd2b   :  { %p2340_p6 = por %p2339_p5, %p2338_p4 }
 0xd2d   :  { %p2341_p7 = pnand %p2340_p6, %p2334_p3 }
 0xd2f   :  { %2344 = shalt.err (!%p2341_p7)
}
 0xd30   :  { %s2345_s3 = scalar_lea.hbm %s2942_s18, 96 }
 0xd31   :  { %p2346_p8 = scmp.ne.s32.totalorder %s2942_s18, %s2345_s3  ;;  %p2349_p9 = scmp.lt.u32.totalorder %s2345_s3, %s2942_s18 }
 0xd33   :  { %p2351_p10 = pnand %p2349_p9, %p2346_p8 }
 0xd35   :  { %2354 = shalt.err (!%p2351_p10)
}
 0xd36   :  { %1664 = dma.vmem_to_hbm [thread:$0]  %s1659_s9, 96, %s2942_s18, [#allocation30], %s2405_s26, %s2405_s26, %s2406_s27   ;;  %v1768_v25 = vld [vmem:[#allocation27] ss:$0 sm:$0xff] }
 0xd37   :  { %s2427_s7 = smov [#allocation28]  }
 0xd38   :  { %s1637_s1 = sshll.u32 %s2427_s7, 4  ;;  %s1638_s1 = int_to_ptr.vmem [resolvable:$true] %s1637_s1 }
 0xd39   :  { %s2355_s28 = scalar_lea.vmem %s1638_s1, 32  ;;  %p2360_p12 = scmp.lt.s32.totalorder %s1638_s1, %s1638_s1 }
 0xd3a   :  { %p2356_p11 = scmp.ne.s32.totalorder %s1638_s1, %s2355_s28  ;;  %p2361_p13 = scmp.lt.s32.totalorder %s2355_s28, %s2355_s28 }
 0xd3c   :  { %p2362_p0 = por %p2361_p13, %p2360_p12 }
 0xd3e   :  { %p2363_p1 = pnand %p2362_p0, %p2356_p11 }
 0xdf0   :  { %v1626_v2 = vpop.f32.mrb[12].mxu1 }
 0xdf1   :  { %v1627_v3 = vadd.f32 %v1768_v25, %v1626_v2  ;;  %v1945_v6 = vpop.f32.mrb[13].mxu1 }
 0xdf3   :  { %1630 = vst [vmem:[#allocation28] sm:$0x3] %v1627_v3 }
 0xdf4   :  { %2366 = shalt.err (!%p2363_p1)
}
 0xdf5   :  { %s2367_s23 = scalar_lea.hbm %s2940_s16, 32 }
 0xdf6   :  { %p2368_p2 = scmp.ne.s32.totalorder %s2940_s16, %s2367_s23  ;;  %p2371_p3 = scmp.lt.u32.totalorder %s2367_s23, %s2940_s16 }
 0xdf8   :  { %p2373_p4 = pnand %p2371_p3, %p2368_p2 }
 0xdfa   :  { %2376 = shalt.err (!%p2373_p4)
}
 0xdfb   :  { %1640 = dma.vmem_to_hbm [thread:$0]  %s1638_s1, 32, %s2940_s16, [#allocation12]  }
 0xdfc   :  { %2399 = dma.done.wait [#allocation12], 32  }
 0xdfd   :  { %2400 = vsyncadd [#allocation12], 4294967264 }
 0xdfe   :  { %2401 = dma.done.wait [#allocation30], 192  }
 0xdff   :  { %2402 = vsyncadd [#allocation30], 4294967104 }
 0xe00   :  { %1674 = vsyncpa [#allocation11], 1 }
 0xe01   :  { %1675 = vsyncpa [#allocation14], 1 }
 0xe02   :  { %1676 = vsyncpa [#allocation17], 1 }
 0xe03   :  { %1677 = vsyncpa [#allocation20], 1 }
 0xe04   :  { %1678 = vsyncpa [#allocation23], 1 }
 0xe05   :  { %1679 = vsyncpa [#allocation26], 1 }
 0xe06   :  { %1680 = vsyncpa [#allocation12], 1 }
 0xe07   :  { %1681 = vsyncpa [#allocation30], 1 }
 0xe08   :  { %1682 = vsyncmov [#allocation6] }
 0xe0b   :  { %s1683_s5 = vpop.sfrf %1682 }
 0xe0c   :  { %p1770_p5 = scmp.ne.s32.totalorder %s1683_s5, 0 }
 0xe0e   :  { %1687 = shalt.err (%p1770_p5)  }
 0xe0f   :  { %1689 = vsyncmov [#allocation6 + $0x1] }
 0xe12   :  { %s1690_s6 = vpop.sfrf %1689 }
 0xe13   :  { %p1771_p6 = scmp.ne.s32.totalorder %s1690_s6, 0 }
 0xe15   :  { %1694 = shalt.err (%p1771_p6)  }
 0xe16   :  { %1695 = vsyncmov [#allocation7] }
 0xe19   :  { %s1696_s16 = vpop.sfrf %1695 }
 0xe1a   :  { %p1772_p7 = scmp.ne.s32.totalorder %s1696_s16, 0 }
 0xe1c   :  { %1700 = shalt.err (%p1772_p7)  }
 0xe1d   :  { %1702 = vsyncmov [#allocation7 + $0x1] }
 0xe20   :  { %s1703_s15 = vpop.sfrf %1702 }
 0xe21   :  { %p1773_p8 = scmp.ne.s32.totalorder %s1703_s15, 0 }
 0xe23   :  { %1707 = shalt.err (%p1773_p8)  }

</bundles_post_ra>
